<compile_context>
chip_gen: v5e
topology: v5e:2x2
jax: 0.10.0
libtpu: 0.0.40
codegen_flags: <defaults>
</compile_context>

<pallas_src>
import functools
import math

import jax
import jax.numpy as jnp
from jax.experimental import pallas as pl
from jax.experimental.pallas import tpu as pltpu


def _round_up(x, m):
    return ((x + m - 1) // m) * m


def _pick_batch_tile(batch, sp):
    """Bt sequences per grid step: grow M = Bt*Sp toward the MXU row count,
    keep >= 2 grid steps when B >= 2 (v7x megacore), Bt must divide B."""
    bt = 1
    for cand in range(1, batch + 1):
        if cand * sp > 1024:          # cap scores width / VMEM working set
            break
        if batch % cand:
            continue
        if batch // cand >= 2 or batch == 1:
            bt = cand
    return bt


# -----------------------------------------------------------------------------
# Fused kernel: encoder layer (CLS row only downstream of attention) + fc head
# + softmax, Bt batch elements per grid step.
# -----------------------------------------------------------------------------
def fused_encoder_head_kernel(
    x_ref,        # (Bt, Sp, Hp) bf16  embedded tokens (zero-padded)
    bias_ref,     # (1, Bt*Sp)   f32   additive key-padding bias (-1e9 on pads)
    wq_ref,       # (Hp, Hp)     bf16  WQ with 1/sqrt(H) folded in
    wkv_ref,      # (Hp, 2*Hp)   bf16  fused [WK | WV]
    wo_ref,       # (Hp, Hp)     bf16
    w1_ref,       # (Hp, Fp)     bf16
    b1_ref,       # (1, Fp)      f32
    w2_ref,       # (Fp, Hp)     bf16
    b2_ref,       # (1, Hp)      f32
    ln1_w_ref, ln1_b_ref, ln2_w_ref, ln2_b_ref,   # (1, Hp) f32
    fc_w_ref,     # (Hp, Op)     bf16
    fc_b_ref,     # (1, Op)      f32
    out_ref,      # (Bt, Op)     f32   softmax probabilities (padded cols -> 0)
    *, h_real, out_real, sp, bt,
):
    f32 = jnp.float32
    bf16 = jnp.bfloat16
    Hp = wq_ref.shape[0]

    x = x_ref[...]                                   # (Bt, Sp, Hp) bf16
    x_flat = x.reshape(bt * sp, Hp)                  # all tokens (keys/values)
    x_cls = x[:, 0, :]                               # (Bt, Hp) CLS tokens only

    # lane-validity mask: LayerNorm variance only over the real hidden size
    # (padded lanes are exactly zero throughout, so the mean needs no mask).
    lane = jax.lax.broadcasted_iota(jnp.int32, (1, Hp), 1)
    lane_mask = (lane < h_real).astype(f32)

    def layer_norm(t, w, b):                         # t: (Bt, Hp) f32
        mu = jnp.sum(t, axis=-1, keepdims=True) * (1.0 / h_real)
        centered = t - mu
        cm = centered * lane_mask
        var = jnp.sum(cm * cm, axis=-1, keepdims=True) * (1.0 / h_real)
        # TODO(synk): eps=1e-12 matches HF BERT; nn.TransformerEncoderLayer uses 1e-5.
        return centered * jax.lax.rsqrt(var + 1e-12) * w + b

    # ---- K/V for every token: one (Bt*Sp, Hp) @ (Hp, 2Hp) bf16 MXU matmul ----
    kv = jnp.dot(x_flat, wkv_ref[...], preferred_element_type=f32)
    k = kv[:, :Hp]
    v = kv[:, Hp:]

    # ---- Q only for the CLS rows (scale pre-folded into WQ) ----
    # TODO(synk): single-head attention; a multi-head backbone would split Hp
    # into heads with per-head 1/sqrt(H/nhead) scaling.
    q = jnp.dot(x_cls, wq_ref[...], preferred_element_type=f32)      # (Bt, Hp)

    # ---- scores over all keys of the batch tile; block-diagonal mask keeps
    #      each CLS row inside its own sequence ----
    scores = jax.lax.dot_general(
        q.astype(bf16), k.astype(bf16),
        dimension_numbers=(((1,), (1,)), ((), ())),                  # q @ k^T
        preferred_element_type=f32)                                  # (Bt, Bt*Sp)
    scores = scores + bias_ref[...]                                  # key padding
    col = jax.lax.broadcasted_iota(jnp.int32, (bt, bt * sp), 1)
    row = jax.lax.broadcasted_iota(jnp.int32, (bt, bt * sp), 0)
    in_seq = (col >= row * sp) & (col < (row + 1) * sp)
    scores = jnp.where(in_seq, scores, -1e30)

    m = jnp.max(scores, axis=-1, keepdims=True)
    p = jnp.exp(scores - m)                                          # unnormalized
    denom = jnp.sum(p, axis=-1, keepdims=True)                       # (Bt, 1)

    # deferred softmax normalization: scale the small (Bt, Hp) context instead
    # of the (Bt, Bt*Sp) probability matrix; reciprocal stays on the EUP slot.
    attn = jnp.dot(p.astype(bf16), v.astype(bf16), preferred_element_type=f32)
    attn = attn * pl.reciprocal(denom, approx=True)                  # (Bt, Hp)
    attn = jnp.dot(attn.astype(bf16), wo_ref[...], preferred_element_type=f32)

    # ---- residual + LayerNorm 1 (f32 VPU math) ----
    h = layer_norm(x_cls.astype(f32) + attn, ln1_w_ref[...], ln1_b_ref[...])

    # ---- feed-forward on the CLS rows only ----
    # TODO(synk): tanh-approx GELU; HF BERT uses exact erf GELU (tiny drift).
    f = jnp.dot(h.astype(bf16), w1_ref[...], preferred_element_type=f32) + b1_ref[...]
    f = jax.nn.gelu(f)
    f = jnp.dot(f.astype(bf16), w2_ref[...], preferred_element_type=f32) + b2_ref[...]

    # ---- residual + LayerNorm 2 ----
    o = layer_norm(h + f, ln2_w_ref[...], ln2_b_ref[...])

    # ---- classification head + softmax (fc_dropout is identity at inference) ----
    logits = jnp.dot(o.astype(bf16), fc_w_ref[...], preferred_element_type=f32)
    logits = logits + fc_b_ref[...]
    out_lane = jax.lax.broadcasted_iota(jnp.int32, logits.shape, 1)
    logits = jnp.where(out_lane < out_real, logits, -1e30)           # pad classes -> 0
    lm = jnp.max(logits, axis=-1, keepdims=True)
    e = jnp.exp(logits - lm)
    probs = e / jnp.sum(e, axis=-1, keepdims=True)                   # exact: sums to 1
    out_ref[...] = probs.astype(out_ref.dtype)


# -----------------------------------------------------------------------------
# One-time weight preparation (pad, fuse, bf16-cast, fold attention scale)
# -----------------------------------------------------------------------------
def prepare_params(params):
    H = params["wq"].shape[0]
    F = params["w1"].shape[1]
    OUT = params["fc_w"].shape[1]
    Hp, Fp, Op = _round_up(H, 128), _round_up(F, 128), _round_up(OUT, 128)
    f32, bf16 = jnp.float32, jnp.bfloat16

    def pad2(a, r, c, dtype):
        return jnp.pad(a, ((0, r - a.shape[0]), (0, c - a.shape[1]))).astype(dtype)

    def pad_vec(a, n):
        return jnp.pad(a, (0, n - a.shape[0])).astype(f32).reshape(1, n)

    scale = 1.0 / math.sqrt(H)                    # folded into WQ (no in-kernel mul)
    weights = {
        "emb": pad2(params["emb"], params["emb"].shape[0], Hp, bf16),
        "wq": pad2(params["wq"] * scale, Hp, Hp, bf16),
        "wkv": jnp.concatenate([pad2(params["wk"], Hp, Hp, bf16),
                                pad2(params["wv"], Hp, Hp, bf16)], axis=1),
        "wo": pad2(params["wo"], Hp, Hp, bf16),
        "w1": pad2(params["w1"], Hp, Fp, bf16),
        "b1": pad_vec(params["b1"], Fp),
        "w2": pad2(params["w2"], Fp, Hp, bf16),
        "b2": pad_vec(params["b2"], Hp),
        "ln1_w": pad_vec(params["ln1_w"], Hp),
        "ln1_b": pad_vec(params["ln1_b"], Hp),
        "ln2_w": pad_vec(params["ln2_w"], Hp),
        "ln2_b": pad_vec(params["ln2_b"], Hp),
        "fc_w": pad2(params["fc_w"], Hp, Op, bf16),
        "fc_b": pad_vec(params["fc_b"], Op),
    }
    weights = jax.tree_util.tree_map(jnp.asarray, weights)
    return weights, int(H), int(OUT)


# -----------------------------------------------------------------------------
# Forward
# -----------------------------------------------------------------------------
@functools.partial(jax.jit,
                   static_argnames=("h_real", "out_real", "single_buffer_weights"))
def _forward(weights, input_ids, attention_mask, *, h_real, out_real,
             single_buffer_weights):
    B, S = input_ids.shape
    Hp = weights["wq"].shape[0]
    Fp = weights["w1"].shape[1]
    Op = weights["fc_w"].shape[1]
    Sp = _round_up(S, 128)                        # lane-dense scores / clean MXU K dim
    Bt = _pick_batch_tile(B, Sp)
    n_tiles = B // Bt
    f32 = jnp.float32

    # Per-call activation prep only (weights were prepared once, outside).
    x = weights["emb"][input_ids]                             # (B, S, Hp) bf16
    x = jnp.pad(x, ((0, 0), (0, Sp - S), (0, 0)))             # (B, Sp, Hp)
    x = x.reshape(n_tiles * Bt, Sp, Hp)

    maskf = jnp.pad(attention_mask.astype(f32), ((0, 0), (0, Sp - S)))
    bias = ((1.0 - maskf) * (-1e9)).reshape(n_tiles, 1, Bt * Sp)

    kernel = functools.partial(fused_encoder_head_kernel,
                               h_real=h_real, out_real=out_real, sp=Sp, bt=Bt)

    rep = lambda b: (0, 0)                                    # replicated weights
    if single_buffer_weights:
        # Constant index_map -> fetched once; a single buffer halves weight VMEM.
        wspec = lambda shape: pl.BlockSpec(shape, rep, pipeline_mode=pl.Buffered(1))
    else:
        wspec = lambda shape: pl.BlockSpec(shape, rep)

    # Explicit VMEM budget (v7x: 64 MiB physical; v5e default scoped: 16 MiB).
    wf = 1 if single_buffer_weights else 2
    weight_bytes = sum(math.prod(v.shape) * v.dtype.itemsize
                       for k, v in weights.items() if k != "emb")
    stream_bytes = 2 * (Bt * Sp * Hp * 2 + Bt * Sp * 4 + Bt * Op * 4)
    temp_bytes = 4 * (Bt * Sp * 2 * Hp + Bt * Bt * Sp + Bt * (Fp + 4 * Hp))
    vmem_limit = int(wf * weight_bytes + stream_bytes + 2 * temp_bytes) + (2 << 20)
    vmem_limit = min(48 << 20, max(16 << 20, vmem_limit))

    probs = pl.pallas_call(
        kernel,
        out_shape=jax.ShapeDtypeStruct((n_tiles, Bt, Op), f32),
        grid=(n_tiles,),
        in_specs=[
            pl.BlockSpec((Bt, Sp, Hp), lambda b: (b, 0, 0)),       # x (batch tile)
            pl.BlockSpec((None, 1, Bt * Sp), lambda b: (b, 0, 0)), # key-padding bias
            wspec((Hp, Hp)),          # wq (scale folded in)
            wspec((Hp, 2 * Hp)),      # wkv
            wspec((Hp, Hp)),          # wo
            wspec((Hp, Fp)),          # w1
            wspec((1, Fp)),           # b1
            wspec((Fp, Hp)),          # w2
            wspec((1, Hp)),           # b2
            wspec((1, Hp)),           # ln1_w
            wspec((1, Hp)),           # ln1_b
            wspec((1, Hp)),           # ln2_w
            wspec((1, Hp)),           # ln2_b
            wspec((Hp, Op)),          # fc_w
            wspec((1, Op)),           # fc_b
        ],
        out_specs=pl.BlockSpec((None, Bt, Op), lambda b: (b, 0, 0)),
        # Batch-tile axis is independent -> shard across the 2 v7x TensorCores.
        # TODO(synk): for B == 1 on v7x, add a second parallel axis over FFN
        # columns so both cores are busy on single-request inference.
        compiler_params=pltpu.CompilerParams(
            dimension_semantics=("parallel",),
            vmem_limit_bytes=vmem_limit),
    )(x, bias, weights["wq"], weights["wkv"], weights["wo"],
      weights["w1"], weights["b1"], weights["w2"], weights["b2"],
      weights["ln1_w"], weights["ln1_b"], weights["ln2_w"], weights["ln2_b"],
      weights["fc_w"], weights["fc_b"])

    return probs.reshape(B, Op)[:, :out_real]


def custom_model_forward(prepared, input_ids, attention_mask):
    weights, h_real, out_real = prepared
    err = None
    # Try single-buffered replicated weights first; fall back if this Pallas /
    # Mosaic version rejects pipeline_mode on a top-level pallas_call BlockSpec.
    for single_buf in (True, False):
        try:
            return _forward(weights, input_ids, attention_mask,
                            h_real=h_real, out_real=out_real,
                            single_buffer_weights=single_buf)
        except Exception as e:   # noqa: BLE001 - genuine bugs re-raise below
            err = e
    raise err


def init_params(key, *, vocab_size, hidden_size, ffn_size, out_dim,
                initializer_range=0.02):
    ks = jax.random.split(key, 8)
    normal = lambda k, shape: (initializer_range *
                               jax.random.normal(k, shape, dtype=jnp.float32))
    return {
        "emb": normal(ks[0], (vocab_size, hidden_size)),
        "wq": normal(ks[1], (hidden_size, hidden_size)),
        "wk": normal(ks[2], (hidden_size, hidden_size)),
        "wv": normal(ks[3], (hidden_size, hidden_size)),
        "wo": normal(ks[4], (hidden_size, hidden_size)),
        "w1": normal(ks[5], (hidden_size, ffn_size)),
        "b1": jnp.zeros((ffn_size,), jnp.float32),
        "w2": normal(ks[6], (ffn_size, hidden_size)),
        "b2": jnp.zeros((hidden_size,), jnp.float32),
        # LayerNorm init matches _init_weights: weight=1, bias=0
        "ln1_w": jnp.ones((hidden_size,), jnp.float32),
        "ln1_b": jnp.zeros((hidden_size,), jnp.float32),
        "ln2_w": jnp.ones((hidden_size,), jnp.float32),
        "ln2_b": jnp.zeros((hidden_size,), jnp.float32),
        # fc init matches _init_weights: normal(std=initializer_range), bias=0
        "fc_w": normal(ks[7], (hidden_size, out_dim)),
        "fc_b": jnp.zeros((out_dim,), jnp.float32),
    }


if __name__ == "__main__":
    # Small shapes consistent with the module's forward: batch=2, seq=8,
    # hidden=32, ffn=64, out_dim=4, vocab=100.
    B, S, H, F, OUT, VOCAB = 2, 8, 32, 64, 4, 100

    key = jax.random.PRNGKey(0)
    k_params, k_ids = jax.random.split(key)
    params = init_params(k_params, vocab_size=VOCAB, hidden_size=H,
                         ffn_size=F, out_dim=OUT)
    prepared = prepare_params(params)            # one-time weight prep (hoisted)

    input_ids = jax.random.randint(k_ids, (B, S), 0, VOCAB, dtype=jnp.int32)
    attention_mask = jnp.ones((B, S), dtype=jnp.int32)
    attention_mask = attention_mask.at[1, 6:].set(0)   # pad tail of 2nd sequence

    # TODO(synk): fc_dropout is inference-mode identity (no RNG dropout applied).
    probs = custom_model_forward(prepared, input_ids, attention_mask)
    probs = jax.block_until_ready(probs)

    assert probs.shape == (B, OUT)
    row_sums = jnp.sum(probs, axis=1)
    assert bool(jnp.all(jnp.isfinite(probs)))
    assert bool(jnp.all(jnp.abs(row_sums - 1.0) < 1e-5))
    print("KERNEL_OK")
</pallas_src>

<mosaic_0001>
module attributes {stable_mosaic.version = 11 : i64} {
  func.func @fused_encoder_head_kernel(%arg0: i32, %arg1: memref<1x128x128xbf16, #tpu.memory_space<vmem>>, %arg2: memref<1x1x128xf32, #tpu.memory_space<vmem>>, %arg3: memref<128x128xbf16, #tpu.memory_space<vmem>>, %arg4: memref<128x256xbf16, #tpu.memory_space<vmem>>, %arg5: memref<128x128xbf16, #tpu.memory_space<vmem>>, %arg6: memref<128x128xbf16, #tpu.memory_space<vmem>>, %arg7: memref<1x128xf32, #tpu.memory_space<vmem>>, %arg8: memref<128x128xbf16, #tpu.memory_space<vmem>>, %arg9: memref<1x128xf32, #tpu.memory_space<vmem>>, %arg10: memref<1x128xf32, #tpu.memory_space<vmem>>, %arg11: memref<1x128xf32, #tpu.memory_space<vmem>>, %arg12: memref<1x128xf32, #tpu.memory_space<vmem>>, %arg13: memref<1x128xf32, #tpu.memory_space<vmem>>, %arg14: memref<128x128xbf16, #tpu.memory_space<vmem>>, %arg15: memref<1x128xf32, #tpu.memory_space<vmem>>, %arg16: memref<1x1x128xf32, #tpu.memory_space<vmem>>) attributes {dimension_semantics = [#tpu.dimension_semantics<parallel>], iteration_bounds = array<i64: 2>, scalar_prefetch = 0 : i64, scratch_operands = 0 : i64, tpu.core_type = #tpu.core_type<tc>, window_params = [{transform_indices = @transform_0, window_bounds = array<i64: 1, 128, 128>}, {transform_indices = @transform_1, window_bounds = array<i64: 1, 1, 128>}, {pipeline_mode = #tpu.pipeline_mode<synchronous>, transform_indices = @transform_2, window_bounds = array<i64: 128, 128>}, {pipeline_mode = #tpu.pipeline_mode<synchronous>, transform_indices = @transform_3, window_bounds = array<i64: 128, 256>}, {pipeline_mode = #tpu.pipeline_mode<synchronous>, transform_indices = @transform_4, window_bounds = array<i64: 128, 128>}, {pipeline_mode = #tpu.pipeline_mode<synchronous>, transform_indices = @transform_5, window_bounds = array<i64: 128, 128>}, {pipeline_mode = #tpu.pipeline_mode<synchronous>, transform_indices = @transform_6, window_bounds = array<i64: 1, 128>}, {pipeline_mode = #tpu.pipeline_mode<synchronous>, transform_indices = @transform_7, window_bounds = array<i64: 128, 128>}, {pipeline_mode = #tpu.pipeline_mode<synchronous>, transform_indices = @transform_8, window_bounds = array<i64: 1, 128>}, {pipeline_mode = #tpu.pipeline_mode<synchronous>, transform_indices = @transform_9, window_bounds = array<i64: 1, 128>}, {pipeline_mode = #tpu.pipeline_mode<synchronous>, transform_indices = @transform_10, window_bounds = array<i64: 1, 128>}, {pipeline_mode = #tpu.pipeline_mode<synchronous>, transform_indices = @transform_11, window_bounds = array<i64: 1, 128>}, {pipeline_mode = #tpu.pipeline_mode<synchronous>, transform_indices = @transform_12, window_bounds = array<i64: 1, 128>}, {pipeline_mode = #tpu.pipeline_mode<synchronous>, transform_indices = @transform_13, window_bounds = array<i64: 128, 128>}, {pipeline_mode = #tpu.pipeline_mode<synchronous>, transform_indices = @transform_14, window_bounds = array<i64: 1, 128>}, {transform_indices = @transform_15, window_bounds = array<i64: 1, 1, 128>}]} {
    %c0 = arith.constant 0 : index
    %c0_0 = arith.constant 0 : index
    %c0_1 = arith.constant 0 : index
    %0 = vector.load %arg1[%c0, %c0_0, %c0_1] : memref<1x128x128xbf16, #tpu.memory_space<vmem>>, vector<1x128x128xbf16>
    %1 = vector.shape_cast %0 : vector<1x128x128xbf16> to vector<128x128xbf16>
    %2 = vector.extract_strided_slice %0 {offsets = [0, 0, 0], sizes = [1, 1, 128], strides = [1, 1, 1]} : vector<1x128x128xbf16> to vector<1x1x128xbf16>
    %3 = vector.shape_cast %2 : vector<1x1x128xbf16> to vector<1x128xbf16>
    %4 = tpu.iota {dimensions = array<i32: 1>} : vector<1x128xi32>
    %c32_i32 = arith.constant 32 : i32
    %5 = vector.broadcast %c32_i32 : i32 to vector<1x128xi32>
    %6 = arith.cmpi slt, %4, %5 : vector<1x128xi32>
    %7 = arith.extui %6 : vector<1x128xi1> to vector<1x128xi32>
    %8 = arith.sitofp %7 : vector<1x128xi32> to vector<1x128xf32>
    %c0_2 = arith.constant 0 : index
    %c0_3 = arith.constant 0 : index
    %9 = vector.load %arg4[%c0_2, %c0_3] : memref<128x256xbf16, #tpu.memory_space<vmem>>, vector<128x256xbf16>
    %cst = arith.constant dense<0.000000e+00> : vector<128x256xf32>
    %10 = tpu.matmul %1, %9, %cst {dimension_numbers = #tpu.dot_dimension_numbers<[1], [0], [0], [1], [0, 0, 1, 1], [], []>} : vector<128x128xbf16>, vector<128x256xbf16>, vector<128x256xf32> -> vector<128x256xf32>
    %11 = vector.extract_strided_slice %10 {offsets = [0, 0], sizes = [128, 128], strides = [1, 1]} : vector<128x256xf32> to vector<128x128xf32>
    %12 = vector.extract_strided_slice %10 {offsets = [0, 128], sizes = [128, 128], strides = [1, 1]} : vector<128x256xf32> to vector<128x128xf32>
    %c0_4 = arith.constant 0 : index
    %c0_5 = arith.constant 0 : index
    %13 = vector.load %arg3[%c0_4, %c0_5] : memref<128x128xbf16, #tpu.memory_space<vmem>>, vector<128x128xbf16>
    %cst_6 = arith.constant dense<0.000000e+00> : vector<1x128xf32>
    %14 = tpu.matmul %3, %13, %cst_6 {dimension_numbers = #tpu.dot_dimension_numbers<[1], [0], [0], [1], [0, 0, 1, 1], [], []>} : vector<1x128xbf16>, vector<128x128xbf16>, vector<1x128xf32> -> vector<1x128xf32>
    %15 = arith.truncf %14 : vector<1x128xf32> to vector<1x128xbf16>
    %16 = arith.truncf %11 : vector<128x128xf32> to vector<128x128xbf16>
    %cst_7 = arith.constant dense<0.000000e+00> : vector<1x128xf32>
    %17 = tpu.matmul %15, %16, %cst_7 {dimension_numbers = #tpu.dot_dimension_numbers<[1], [1], [0], [0], [0, 0, 1, 0], [], []>} : vector<1x128xbf16>, vector<128x128xbf16>, vector<1x128xf32> -> vector<1x128xf32>
    %c0_8 = arith.constant 0 : index
    %c0_9 = arith.constant 0 : index
    %c0_10 = arith.constant 0 : index
    %18 = vector.load %arg2[%c0_8, %c0_9, %c0_10] : memref<1x1x128xf32, #tpu.memory_space<vmem>>, vector<1x1x128xf32>
    %19 = vector.shape_cast %18 : vector<1x1x128xf32> to vector<1x128xf32>
    %20 = arith.addf %17, %19 : vector<1x128xf32>
    %21 = tpu.iota {dimensions = array<i32: 1>} : vector<1x128xi32>
    %22 = tpu.iota {dimensions = array<i32: 0>} : vector<1x128xi32>
    %c128_i32 = arith.constant 128 : i32
    %23 = vector.broadcast %c128_i32 : i32 to vector<1x128xi32>
    %24 = arith.muli %22, %23 : vector<1x128xi32>
    %25 = arith.cmpi sge, %21, %24 : vector<1x128xi32>
    %c1_i32 = arith.constant 1 : i32
    %26 = vector.broadcast %c1_i32 : i32 to vector<1x128xi32>
    %27 = arith.addi %22, %26 : vector<1x128xi32>
    %c128_i32_11 = arith.constant 128 : i32
    %28 = vector.broadcast %c128_i32_11 : i32 to vector<1x128xi32>
    %29 = arith.muli %27, %28 : vector<1x128xi32>
    %30 = arith.cmpi slt, %21, %29 : vector<1x128xi32>
    %31 = arith.andi %25, %30 : vector<1x128xi1>
    %cst_12 = arith.constant -1.000000e+30 : f32
    %32 = vector.broadcast %cst_12 : f32 to vector<1x128xf32>
    %33 = arith.select %31, %20, %32 : vector<1x128xi1>, vector<1x128xf32>
    %cst_13 = arith.constant dense<0xFF800000> : vector<1xf32>
    %34 = vector.multi_reduction <maximumf>, %33, %cst_13 [1] : vector<1x128xf32> to vector<1xf32>
    %35 = vector.shape_cast %34 : vector<1xf32> to vector<1x1xf32>
    %36 = vector.broadcast %35 : vector<1x1xf32> to vector<1x128xf32>
    %37 = arith.subf %33, %36 : vector<1x128xf32>
    %38 = math.exp %37 : vector<1x128xf32>
    %cst_14 = arith.constant dense<0.000000e+00> : vector<1xf32>
    %39 = vector.multi_reduction <add>, %38, %cst_14 [1] : vector<1x128xf32> to vector<1xf32>
    %40 = vector.shape_cast %39 : vector<1xf32> to vector<1x1xf32>
    %41 = arith.truncf %38 : vector<1x128xf32> to vector<1x128xbf16>
    %42 = arith.truncf %12 : vector<128x128xf32> to vector<128x128xbf16>
    %cst_15 = arith.constant dense<0.000000e+00> : vector<1x128xf32>
    %43 = tpu.matmul %41, %42, %cst_15 {dimension_numbers = #tpu.dot_dimension_numbers<[1], [0], [0], [1], [0, 0, 1, 1], [], []>} : vector<1x128xbf16>, vector<128x128xbf16>, vector<1x128xf32> -> vector<1x128xf32>
    %44 = tpu.reciprocal %40 {approx = true} : vector<1x1xf32> -> vector<1x1xf32>
    %45 = vector.broadcast %44 : vector<1x1xf32> to vector<1x128xf32>
    %46 = arith.mulf %43, %45 : vector<1x128xf32>
    %47 = arith.truncf %46 : vector<1x128xf32> to vector<1x128xbf16>
    %c0_16 = arith.constant 0 : index
    %c0_17 = arith.constant 0 : index
    %48 = vector.load %arg5[%c0_16, %c0_17] : memref<128x128xbf16, #tpu.memory_space<vmem>>, vector<128x128xbf16>
    %cst_18 = arith.constant dense<0.000000e+00> : vector<1x128xf32>
    %49 = tpu.matmul %47, %48, %cst_18 {dimension_numbers = #tpu.dot_dimension_numbers<[1], [0], [0], [1], [0, 0, 1, 1], [], []>} : vector<1x128xbf16>, vector<128x128xbf16>, vector<1x128xf32> -> vector<1x128xf32>
    %50 = arith.extf %3 : vector<1x128xbf16> to vector<1x128xf32>
    %51 = arith.addf %50, %49 : vector<1x128xf32>
    %c0_19 = arith.constant 0 : index
    %c0_20 = arith.constant 0 : index
    %52 = vector.load %arg10[%c0_19, %c0_20] : memref<1x128xf32, #tpu.memory_space<vmem>>, vector<1x128xf32>
    %c0_21 = arith.constant 0 : index
    %c0_22 = arith.constant 0 : index
    %53 = vector.load %arg11[%c0_21, %c0_22] : memref<1x128xf32, #tpu.memory_space<vmem>>, vector<1x128xf32>
    %cst_23 = arith.constant dense<0.000000e+00> : vector<1xf32>
    %54 = vector.multi_reduction <add>, %51, %cst_23 [1] : vector<1x128xf32> to vector<1xf32>
    %55 = vector.shape_cast %54 : vector<1xf32> to vector<1x1xf32>
    %cst_24 = arith.constant 3.125000e-02 : f32
    %56 = vector.broadcast %cst_24 : f32 to vector<1x1xf32>
    %57 = arith.mulf %55, %56 : vector<1x1xf32>
    %58 = vector.broadcast %57 : vector<1x1xf32> to vector<1x128xf32>
    %59 = arith.subf %51, %58 : vector<1x128xf32>
    %60 = arith.mulf %59, %8 : vector<1x128xf32>
    %61 = arith.mulf %60, %60 : vector<1x128xf32>
    %cst_25 = arith.constant dense<0.000000e+00> : vector<1xf32>
    %62 = vector.multi_reduction <add>, %61, %cst_25 [1] : vector<1x128xf32> to vector<1xf32>
    %63 = vector.shape_cast %62 : vector<1xf32> to vector<1x1xf32>
    %cst_26 = arith.constant 3.125000e-02 : f32
    %64 = vector.broadcast %cst_26 : f32 to vector<1x1xf32>
    %65 = arith.mulf %63, %64 : vector<1x1xf32>
    %cst_27 = arith.constant 9.99999996E-13 : f32
    %66 = vector.broadcast %cst_27 : f32 to vector<1x1xf32>
    %67 = arith.addf %65, %66 : vector<1x1xf32>
    %68 = math.rsqrt %67 : vector<1x1xf32>
    %69 = vector.broadcast %68 : vector<1x1xf32> to vector<1x128xf32>
    %70 = arith.mulf %59, %69 : vector<1x128xf32>
    %71 = arith.mulf %70, %52 : vector<1x128xf32>
    %72 = arith.addf %71, %53 : vector<1x128xf32>
    %73 = arith.truncf %72 : vector<1x128xf32> to vector<1x128xbf16>
    %c0_28 = arith.constant 0 : index
    %c0_29 = arith.constant 0 : index
    %74 = vector.load %arg6[%c0_28, %c0_29] : memref<128x128xbf16, #tpu.memory_space<vmem>>, vector<128x128xbf16>
    %cst_30 = arith.constant dense<0.000000e+00> : vector<1x128xf32>
    %75 = tpu.matmul %73, %74, %cst_30 {dimension_numbers = #tpu.dot_dimension_numbers<[1], [0], [0], [1], [0, 0, 1, 1], [], []>} : vector<1x128xbf16>, vector<128x128xbf16>, vector<1x128xf32> -> vector<1x128xf32>
    %c0_31 = arith.constant 0 : index
    %c0_32 = arith.constant 0 : index
    %76 = vector.load %arg7[%c0_31, %c0_32] : memref<1x128xf32, #tpu.memory_space<vmem>>, vector<1x128xf32>
    %77 = arith.addf %75, %76 : vector<1x128xf32>
    %78 = arith.mulf %77, %77 : vector<1x128xf32>
    %79 = arith.mulf %77, %78 : vector<1x128xf32>
    %cst_33 = arith.constant 4.471500e-02 : f32
    %80 = vector.broadcast %cst_33 : f32 to vector<1x128xf32>
    %81 = arith.mulf %80, %79 : vector<1x128xf32>
    %82 = arith.addf %77, %81 : vector<1x128xf32>
    %cst_34 = arith.constant 0.797884583 : f32
    %83 = vector.broadcast %cst_34 : f32 to vector<1x128xf32>
    %84 = arith.mulf %83, %82 : vector<1x128xf32>
    %85 = math.tanh %84 : vector<1x128xf32>
    %cst_35 = arith.constant 1.000000e+00 : f32
    %86 = vector.broadcast %cst_35 : f32 to vector<1x128xf32>
    %87 = arith.addf %86, %85 : vector<1x128xf32>
    %cst_36 = arith.constant 5.000000e-01 : f32
    %88 = vector.broadcast %cst_36 : f32 to vector<1x128xf32>
    %89 = arith.mulf %88, %87 : vector<1x128xf32>
    %90 = arith.mulf %77, %89 : vector<1x128xf32>
    %91 = arith.truncf %90 : vector<1x128xf32> to vector<1x128xbf16>
    %c0_37 = arith.constant 0 : index
    %c0_38 = arith.constant 0 : index
    %92 = vector.load %arg8[%c0_37, %c0_38] : memref<128x128xbf16, #tpu.memory_space<vmem>>, vector<128x128xbf16>
    %cst_39 = arith.constant dense<0.000000e+00> : vector<1x128xf32>
    %93 = tpu.matmul %91, %92, %cst_39 {dimension_numbers = #tpu.dot_dimension_numbers<[1], [0], [0], [1], [0, 0, 1, 1], [], []>} : vector<1x128xbf16>, vector<128x128xbf16>, vector<1x128xf32> -> vector<1x128xf32>
    %c0_40 = arith.constant 0 : index
    %c0_41 = arith.constant 0 : index
    %94 = vector.load %arg9[%c0_40, %c0_41] : memref<1x128xf32, #tpu.memory_space<vmem>>, vector<1x128xf32>
    %95 = arith.addf %93, %94 : vector<1x128xf32>
    %96 = arith.addf %72, %95 : vector<1x128xf32>
    %c0_42 = arith.constant 0 : index
    %c0_43 = arith.constant 0 : index
    %97 = vector.load %arg12[%c0_42, %c0_43] : memref<1x128xf32, #tpu.memory_space<vmem>>, vector<1x128xf32>
    %c0_44 = arith.constant 0 : index
    %c0_45 = arith.constant 0 : index
    %98 = vector.load %arg13[%c0_44, %c0_45] : memref<1x128xf32, #tpu.memory_space<vmem>>, vector<1x128xf32>
    %cst_46 = arith.constant dense<0.000000e+00> : vector<1xf32>
    %99 = vector.multi_reduction <add>, %96, %cst_46 [1] : vector<1x128xf32> to vector<1xf32>
    %100 = vector.shape_cast %99 : vector<1xf32> to vector<1x1xf32>
    %cst_47 = arith.constant 3.125000e-02 : f32
    %101 = vector.broadcast %cst_47 : f32 to vector<1x1xf32>
    %102 = arith.mulf %100, %101 : vector<1x1xf32>
    %103 = vector.broadcast %102 : vector<1x1xf32> to vector<1x128xf32>
    %104 = arith.subf %96, %103 : vector<1x128xf32>
    %105 = arith.mulf %104, %8 : vector<1x128xf32>
    %106 = arith.mulf %105, %105 : vector<1x128xf32>
    %cst_48 = arith.constant dense<0.000000e+00> : vector<1xf32>
    %107 = vector.multi_reduction <add>, %106, %cst_48 [1] : vector<1x128xf32> to vector<1xf32>
    %108 = vector.shape_cast %107 : vector<1xf32> to vector<1x1xf32>
    %cst_49 = arith.constant 3.125000e-02 : f32
    %109 = vector.broadcast %cst_49 : f32 to vector<1x1xf32>
    %110 = arith.mulf %108, %109 : vector<1x1xf32>
    %cst_50 = arith.constant 9.99999996E-13 : f32
    %111 = vector.broadcast %cst_50 : f32 to vector<1x1xf32>
    %112 = arith.addf %110, %111 : vector<1x1xf32>
    %113 = math.rsqrt %112 : vector<1x1xf32>
    %114 = vector.broadcast %113 : vector<1x1xf32> to vector<1x128xf32>
    %115 = arith.mulf %104, %114 : vector<1x128xf32>
    %116 = arith.mulf %115, %97 : vector<1x128xf32>
    %117 = arith.addf %116, %98 : vector<1x128xf32>
    %118 = arith.truncf %117 : vector<1x128xf32> to vector<1x128xbf16>
    %c0_51 = arith.constant 0 : index
    %c0_52 = arith.constant 0 : index
    %119 = vector.load %arg14[%c0_51, %c0_52] : memref<128x128xbf16, #tpu.memory_space<vmem>>, vector<128x128xbf16>
    %cst_53 = arith.constant dense<0.000000e+00> : vector<1x128xf32>
    %120 = tpu.matmul %118, %119, %cst_53 {dimension_numbers = #tpu.dot_dimension_numbers<[1], [0], [0], [1], [0, 0, 1, 1], [], []>} : vector<1x128xbf16>, vector<128x128xbf16>, vector<1x128xf32> -> vector<1x128xf32>
    %c0_54 = arith.constant 0 : index
    %c0_55 = arith.constant 0 : index
    %121 = vector.load %arg15[%c0_54, %c0_55] : memref<1x128xf32, #tpu.memory_space<vmem>>, vector<1x128xf32>
    %122 = arith.addf %120, %121 : vector<1x128xf32>
    %123 = tpu.iota {dimensions = array<i32: 1>} : vector<1x128xi32>
    %c4_i32 = arith.constant 4 : i32
    %124 = vector.broadcast %c4_i32 : i32 to vector<1x128xi32>
    %125 = arith.cmpi slt, %123, %124 : vector<1x128xi32>
    %cst_56 = arith.constant -1.000000e+30 : f32
    %126 = vector.broadcast %cst_56 : f32 to vector<1x128xf32>
    %127 = arith.select %125, %122, %126 : vector<1x128xi1>, vector<1x128xf32>
    %cst_57 = arith.constant dense<0xFF800000> : vector<1xf32>
    %128 = vector.multi_reduction <maximumf>, %127, %cst_57 [1] : vector<1x128xf32> to vector<1xf32>
    %129 = vector.shape_cast %128 : vector<1xf32> to vector<1x1xf32>
    %130 = vector.broadcast %129 : vector<1x1xf32> to vector<1x128xf32>
    %131 = arith.subf %127, %130 : vector<1x128xf32>
    %132 = math.exp %131 : vector<1x128xf32>
    %cst_58 = arith.constant dense<0.000000e+00> : vector<1xf32>
    %133 = vector.multi_reduction <add>, %132, %cst_58 [1] : vector<1x128xf32> to vector<1xf32>
    %134 = vector.shape_cast %133 : vector<1xf32> to vector<1x1xf32>
    %135 = vector.broadcast %134 : vector<1x1xf32> to vector<1x128xf32>
    %136 = arith.divf %132, %135 : vector<1x128xf32>
    %c0_59 = arith.constant 0 : index
    %c0_60 = arith.constant 0 : index
    %c0_61 = arith.constant 0 : index
    %137 = vector.load %arg16[%c0_59, %c0_60, %c0_61] : memref<1x1x128xf32, #tpu.memory_space<vmem>>, vector<1x1x128xf32>
    %138 = vector.shape_cast %137 : vector<1x1x128xf32> to vector<1x128xf32>
    %139 = vector.shape_cast %136 : vector<1x128xf32> to vector<1x1x128xf32>
    tpu.vector_store %arg16[%c0_59, %c0_60, %c0_61], %139 {strides = array<i32>} : memref<1x1x128xf32, #tpu.memory_space<vmem>>, vector<1x1x128xf32>,
    return
  }
  func.func @transform_0(%arg0: i32) -> (i32, i32, i32) {
    %c0_i32 = arith.constant 0 : i32
    %c0_i32_0 = arith.constant 0 : i32
    %c0_i32_1 = arith.constant 0 : i32
    return %arg0, %c0_i32, %c0_i32_0 : i32, i32, i32
  }
  func.func @transform_1(%arg0: i32) -> (i32, i32, i32) {
    %c0_i32 = arith.constant 0 : i32
    %c0_i32_0 = arith.constant 0 : i32
    %c0_i32_1 = arith.constant 0 : i32
    return %arg0, %c0_i32, %c0_i32_0 : i32, i32, i32
  }
  func.func @transform_2(%arg0: i32) -> (i32, i32) {
    %c0_i32 = arith.constant 0 : i32
    %c0_i32_0 = arith.constant 0 : i32
    %c0_i32_1 = arith.constant 0 : i32
    return %c0_i32, %c0_i32_0 : i32, i32
  }
  func.func @transform_3(%arg0: i32) -> (i32, i32) {
    %c0_i32 = arith.constant 0 : i32
    %c0_i32_0 = arith.constant 0 : i32
    %c0_i32_1 = arith.constant 0 : i32
    return %c0_i32, %c0_i32_0 : i32, i32
  }
  func.func @transform_4(%arg0: i32) -> (i32, i32) {
    %c0_i32 = arith.constant 0 : i32
    %c0_i32_0 = arith.constant 0 : i32
    %c0_i32_1 = arith.constant 0 : i32
    return %c0_i32, %c0_i32_0 : i32, i32
  }
  func.func @transform_5(%arg0: i32) -> (i32, i32) {
    %c0_i32 = arith.constant 0 : i32
    %c0_i32_0 = arith.constant 0 : i32
    %c0_i32_1 = arith.constant 0 : i32
    return %c0_i32, %c0_i32_0 : i32, i32
  }
  func.func @transform_6(%arg0: i32) -> (i32, i32) {
    %c0_i32 = arith.constant 0 : i32
    %c0_i32_0 = arith.constant 0 : i32
    %c0_i32_1 = arith.constant 0 : i32
    return %c0_i32, %c0_i32_0 : i32, i32
  }
  func.func @transform_7(%arg0: i32) -> (i32, i32) {
    %c0_i32 = arith.constant 0 : i32
    %c0_i32_0 = arith.constant 0 : i32
    %c0_i32_1 = arith.constant 0 : i32
    return %c0_i32, %c0_i32_0 : i32, i32
  }
  func.func @transform_8(%arg0: i32) -> (i32, i32) {
    %c0_i32 = arith.constant 0 : i32
    %c0_i32_0 = arith.constant 0 : i32
    %c0_i32_1 = arith.constant 0 : i32
    return %c0_i32, %c0_i32_0 : i32, i32
  }
  func.func @transform_9(%arg0: i32) -> (i32, i32) {
    %c0_i32 = arith.constant 0 : i32
    %c0_i32_0 = arith.constant 0 : i32
    %c0_i32_1 = arith.constant 0 : i32
    return %c0_i32, %c0_i32_0 : i32, i32
  }
  func.func @transform_10(%arg0: i32) -> (i32, i32) {
    %c0_i32 = arith.constant 0 : i32
    %c0_i32_0 = arith.constant 0 : i32
    %c0_i32_1 = arith.constant 0 : i32
    return %c0_i32, %c0_i32_0 : i32, i32
  }
  func.func @transform_11(%arg0: i32) -> (i32, i32) {
    %c0_i32 = arith.constant 0 : i32
    %c0_i32_0 = arith.constant 0 : i32
    %c0_i32_1 = arith.constant 0 : i32
    return %c0_i32, %c0_i32_0 : i32, i32
  }
  func.func @transform_12(%arg0: i32) -> (i32, i32) {
    %c0_i32 = arith.constant 0 : i32
    %c0_i32_0 = arith.constant 0 : i32
    %c0_i32_1 = arith.constant 0 : i32
    return %c0_i32, %c0_i32_0 : i32, i32
  }
  func.func @transform_13(%arg0: i32) -> (i32, i32) {
    %c0_i32 = arith.constant 0 : i32
    %c0_i32_0 = arith.constant 0 : i32
    %c0_i32_1 = arith.constant 0 : i32
    return %c0_i32, %c0_i32_0 : i32, i32
  }
  func.func @transform_14(%arg0: i32) -> (i32, i32) {
    %c0_i32 = arith.constant 0 : i32
    %c0_i32_0 = arith.constant 0 : i32
    %c0_i32_1 = arith.constant 0 : i32
    return %c0_i32, %c0_i32_0 : i32, i32
  }
  func.func @transform_15(%arg0: i32) -> (i32, i32, i32) {
    %c0_i32 = arith.constant 0 : i32
    %c0_i32_0 = arith.constant 0 : i32
    %c0_i32_1 = arith.constant 0 : i32
    return %arg0, %c0_i32, %c0_i32_0 : i32, i32, i32
  }
}

module attributes {stable_mosaic.version = 11 : i64} {
  func.func @fused_encoder_head_kernel(%arg0: i32, %arg1: memref<1x128x128xbf16, #tpu.memory_space<vmem>>, %arg2: memref<1x1x128xf32, #tpu.memory_space<vmem>>, %arg3: memref<128x128xbf16, #tpu.memory_space<vmem>>, %arg4: memref<128x256xbf16, #tpu.memory_space<vmem>>, %arg5: memref<128x128xbf16, #tpu.memory_space<vmem>>, %arg6: memref<128x128xbf16, #tpu.memory_space<vmem>>, %arg7: memref<1x128xf32, #tpu.memory_space<vmem>>, %arg8: memref<128x128xbf16, #tpu.memory_space<vmem>>, %arg9: memref<1x128xf32, #tpu.memory_space<vmem>>, %arg10: memref<1x128xf32, #tpu.memory_space<vmem>>, %arg11: memref<1x128xf32, #tpu.memory_space<vmem>>, %arg12: memref<1x128xf32, #tpu.memory_space<vmem>>, %arg13: memref<1x128xf32, #tpu.memory_space<vmem>>, %arg14: memref<128x128xbf16, #tpu.memory_space<vmem>>, %arg15: memref<1x128xf32, #tpu.memory_space<vmem>>, %arg16: memref<1x1x128xf32, #tpu.memory_space<vmem>>) attributes {dimension_semantics = [#tpu.dimension_semantics<parallel>], iteration_bounds = array<i64: 2>, scalar_prefetch = 0 : i64, scratch_operands = 0 : i64, tpu.core_type = #tpu.core_type<tc>, window_params = [{transform_indices = @transform_0, window_bounds = array<i64: 1, 128, 128>}, {transform_indices = @transform_1, window_bounds = array<i64: 1, 1, 128>}, {pipeline_mode = #tpu.pipeline_mode<synchronous>, transform_indices = @transform_2, window_bounds = array<i64: 128, 128>}, {pipeline_mode = #tpu.pipeline_mode<synchronous>, transform_indices = @transform_3, window_bounds = array<i64: 128, 256>}, {pipeline_mode = #tpu.pipeline_mode<synchronous>, transform_indices = @transform_4, window_bounds = array<i64: 128, 128>}, {pipeline_mode = #tpu.pipeline_mode<synchronous>, transform_indices = @transform_5, window_bounds = array<i64: 128, 128>}, {pipeline_mode = #tpu.pipeline_mode<synchronous>, transform_indices = @transform_6, window_bounds = array<i64: 1, 128>}, {pipeline_mode = #tpu.pipeline_mode<synchronous>, transform_indices = @transform_7, window_bounds = array<i64: 128, 128>}, {pipeline_mode = #tpu.pipeline_mode<synchronous>, transform_indices = @transform_8, window_bounds = array<i64: 1, 128>}, {pipeline_mode = #tpu.pipeline_mode<synchronous>, transform_indices = @transform_9, window_bounds = array<i64: 1, 128>}, {pipeline_mode = #tpu.pipeline_mode<synchronous>, transform_indices = @transform_10, window_bounds = array<i64: 1, 128>}, {pipeline_mode = #tpu.pipeline_mode<synchronous>, transform_indices = @transform_11, window_bounds = array<i64: 1, 128>}, {pipeline_mode = #tpu.pipeline_mode<synchronous>, transform_indices = @transform_12, window_bounds = array<i64: 1, 128>}, {pipeline_mode = #tpu.pipeline_mode<synchronous>, transform_indices = @transform_13, window_bounds = array<i64: 128, 128>}, {pipeline_mode = #tpu.pipeline_mode<synchronous>, transform_indices = @transform_14, window_bounds = array<i64: 1, 128>}, {transform_indices = @transform_15, window_bounds = array<i64: 1, 1, 128>}]} {
    %c0 = arith.constant 0 : index
    %c0_0 = arith.constant 0 : index
    %c0_1 = arith.constant 0 : index
    %0 = vector.load %arg1[%c0, %c0_0, %c0_1] : memref<1x128x128xbf16, #tpu.memory_space<vmem>>, vector<1x128x128xbf16>
    %1 = vector.shape_cast %0 : vector<1x128x128xbf16> to vector<128x128xbf16>
    %2 = vector.extract_strided_slice %0 {offsets = [0, 0, 0], sizes = [1, 1, 128], strides = [1, 1, 1]} : vector<1x128x128xbf16> to vector<1x1x128xbf16>
    %3 = vector.shape_cast %2 : vector<1x1x128xbf16> to vector<1x128xbf16>
    %4 = tpu.iota {dimensions = array<i32: 1>} : vector<1x128xi32>
    %c32_i32 = arith.constant 32 : i32
    %5 = vector.broadcast %c32_i32 : i32 to vector<1x128xi32>
    %6 = arith.cmpi slt, %4, %5 : vector<1x128xi32>
    %7 = arith.extui %6 : vector<1x128xi1> to vector<1x128xi32>
    %8 = arith.sitofp %7 : vector<1x128xi32> to vector<1x128xf32>
    %c0_2 = arith.constant 0 : index
    %c0_3 = arith.constant 0 : index
    %9 = vector.load %arg4[%c0_2, %c0_3] : memref<128x256xbf16, #tpu.memory_space<vmem>>, vector<128x256xbf16>
    %cst = arith.constant dense<0.000000e+00> : vector<128x256xf32>
    %10 = tpu.matmul %1, %9, %cst {dimension_numbers = #tpu.dot_dimension_numbers<[1], [0], [0], [1], [0, 0, 1, 1], [], []>} : vector<128x128xbf16>, vector<128x256xbf16>, vector<128x256xf32> -> vector<128x256xf32>
    %11 = vector.extract_strided_slice %10 {offsets = [0, 0], sizes = [128, 128], strides = [1, 1]} : vector<128x256xf32> to vector<128x128xf32>
    %12 = vector.extract_strided_slice %10 {offsets = [0, 128], sizes = [128, 128], strides = [1, 1]} : vector<128x256xf32> to vector<128x128xf32>
    %c0_4 = arith.constant 0 : index
    %c0_5 = arith.constant 0 : index
    %13 = vector.load %arg3[%c0_4, %c0_5] : memref<128x128xbf16, #tpu.memory_space<vmem>>, vector<128x128xbf16>
    %cst_6 = arith.constant dense<0.000000e+00> : vector<1x128xf32>
    %14 = tpu.matmul %3, %13, %cst_6 {dimension_numbers = #tpu.dot_dimension_numbers<[1], [0], [0], [1], [0, 0, 1, 1], [], []>} : vector<1x128xbf16>, vector<128x128xbf16>, vector<1x128xf32> -> vector<1x128xf32>
    %15 = arith.truncf %14 : vector<1x128xf32> to vector<1x128xbf16>
    %16 = arith.truncf %11 : vector<128x128xf32> to vector<128x128xbf16>
    %cst_7 = arith.constant dense<0.000000e+00> : vector<1x128xf32>
    %17 = tpu.matmul %15, %16, %cst_7 {dimension_numbers = #tpu.dot_dimension_numbers<[1], [1], [0], [0], [0, 0, 1, 0], [], []>} : vector<1x128xbf16>, vector<128x128xbf16>, vector<1x128xf32> -> vector<1x128xf32>
    %c0_8 = arith.constant 0 : index
    %c0_9 = arith.constant 0 : index
    %c0_10 = arith.constant 0 : index
    %18 = vector.load %arg2[%c0_8, %c0_9, %c0_10] : memref<1x1x128xf32, #tpu.memory_space<vmem>>, vector<1x1x128xf32>
    %19 = vector.shape_cast %18 : vector<1x1x128xf32> to vector<1x128xf32>
    %20 = arith.addf %17, %19 : vector<1x128xf32>
    %21 = tpu.iota {dimensions = array<i32: 1>} : vector<1x128xi32>
    %22 = tpu.iota {dimensions = array<i32: 0>} : vector<1x128xi32>
    %c128_i32 = arith.constant 128 : i32
    %23 = vector.broadcast %c128_i32 : i32 to vector<1x128xi32>
    %24 = arith.muli %22, %23 : vector<1x128xi32>
    %25 = arith.cmpi sge, %21, %24 : vector<1x128xi32>
    %c1_i32 = arith.constant 1 : i32
    %26 = vector.broadcast %c1_i32 : i32 to vector<1x128xi32>
    %27 = arith.addi %22, %26 : vector<1x128xi32>
    %c128_i32_11 = arith.constant 128 : i32
    %28 = vector.broadcast %c128_i32_11 : i32 to vector<1x128xi32>
    %29 = arith.muli %27, %28 : vector<1x128xi32>
    %30 = arith.cmpi slt, %21, %29 : vector<1x128xi32>
    %31 = arith.andi %25, %30 : vector<1x128xi1>
    %cst_12 = arith.constant -1.000000e+30 : f32
    %32 = vector.broadcast %cst_12 : f32 to vector<1x128xf32>
    %33 = arith.select %31, %20, %32 : vector<1x128xi1>, vector<1x128xf32>
    %cst_13 = arith.constant dense<0xFF800000> : vector<1xf32>
    %34 = vector.multi_reduction <maximumf>, %33, %cst_13 [1] : vector<1x128xf32> to vector<1xf32>
    %35 = vector.shape_cast %34 : vector<1xf32> to vector<1x1xf32>
    %36 = vector.broadcast %35 : vector<1x1xf32> to vector<1x128xf32>
    %37 = arith.subf %33, %36 : vector<1x128xf32>
    %38 = math.exp %37 : vector<1x128xf32>
    %cst_14 = arith.constant dense<0.000000e+00> : vector<1xf32>
    %39 = vector.multi_reduction <add>, %38, %cst_14 [1] : vector<1x128xf32> to vector<1xf32>
    %40 = vector.shape_cast %39 : vector<1xf32> to vector<1x1xf32>
    %41 = arith.truncf %38 : vector<1x128xf32> to vector<1x128xbf16>
    %42 = arith.truncf %12 : vector<128x128xf32> to vector<128x128xbf16>
    %cst_15 = arith.constant dense<0.000000e+00> : vector<1x128xf32>
    %43 = tpu.matmul %41, %42, %cst_15 {dimension_numbers = #tpu.dot_dimension_numbers<[1], [0], [0], [1], [0, 0, 1, 1], [], []>} : vector<1x128xbf16>, vector<128x128xbf16>, vector<1x128xf32> -> vector<1x128xf32>
    %44 = tpu.reciprocal %40 {approx = true} : vector<1x1xf32> -> vector<1x1xf32>
    %45 = vector.broadcast %44 : vector<1x1xf32> to vector<1x128xf32>
    %46 = arith.mulf %43, %45 : vector<1x128xf32>
    %47 = arith.truncf %46 : vector<1x128xf32> to vector<1x128xbf16>
    %c0_16 = arith.constant 0 : index
    %c0_17 = arith.constant 0 : index
    %48 = vector.load %arg5[%c0_16, %c0_17] : memref<128x128xbf16, #tpu.memory_space<vmem>>, vector<128x128xbf16>
    %cst_18 = arith.constant dense<0.000000e+00> : vector<1x128xf32>
    %49 = tpu.matmul %47, %48, %cst_18 {dimension_numbers = #tpu.dot_dimension_numbers<[1], [0], [0], [1], [0, 0, 1, 1], [], []>} : vector<1x128xbf16>, vector<128x128xbf16>, vector<1x128xf32> -> vector<1x128xf32>
    %50 = arith.extf %3 : vector<1x128xbf16> to vector<1x128xf32>
    %51 = arith.addf %50, %49 : vector<1x128xf32>
    %c0_19 = arith.constant 0 : index
    %c0_20 = arith.constant 0 : index
    %52 = vector.load %arg10[%c0_19, %c0_20] : memref<1x128xf32, #tpu.memory_space<vmem>>, vector<1x128xf32>
    %c0_21 = arith.constant 0 : index
    %c0_22 = arith.constant 0 : index
    %53 = vector.load %arg11[%c0_21, %c0_22] : memref<1x128xf32, #tpu.memory_space<vmem>>, vector<1x128xf32>
    %cst_23 = arith.constant dense<0.000000e+00> : vector<1xf32>
    %54 = vector.multi_reduction <add>, %51, %cst_23 [1] : vector<1x128xf32> to vector<1xf32>
    %55 = vector.shape_cast %54 : vector<1xf32> to vector<1x1xf32>
    %cst_24 = arith.constant 3.125000e-02 : f32
    %56 = vector.broadcast %cst_24 : f32 to vector<1x1xf32>
    %57 = arith.mulf %55, %56 : vector<1x1xf32>
    %58 = vector.broadcast %57 : vector<1x1xf32> to vector<1x128xf32>
    %59 = arith.subf %51, %58 : vector<1x128xf32>
    %60 = arith.mulf %59, %8 : vector<1x128xf32>
    %61 = arith.mulf %60, %60 : vector<1x128xf32>
    %cst_25 = arith.constant dense<0.000000e+00> : vector<1xf32>
    %62 = vector.multi_reduction <add>, %61, %cst_25 [1] : vector<1x128xf32> to vector<1xf32>
    %63 = vector.shape_cast %62 : vector<1xf32> to vector<1x1xf32>
    %cst_26 = arith.constant 3.125000e-02 : f32
    %64 = vector.broadcast %cst_26 : f32 to vector<1x1xf32>
    %65 = arith.mulf %63, %64 : vector<1x1xf32>
    %cst_27 = arith.constant 9.99999996E-13 : f32
    %66 = vector.broadcast %cst_27 : f32 to vector<1x1xf32>
    %67 = arith.addf %65, %66 : vector<1x1xf32>
    %68 = math.rsqrt %67 : vector<1x1xf32>
    %69 = vector.broadcast %68 : vector<1x1xf32> to vector<1x128xf32>
    %70 = arith.mulf %59, %69 : vector<1x128xf32>
    %71 = arith.mulf %70, %52 : vector<1x128xf32>
    %72 = arith.addf %71, %53 : vector<1x128xf32>
    %73 = arith.truncf %72 : vector<1x128xf32> to vector<1x128xbf16>
    %c0_28 = arith.constant 0 : index
    %c0_29 = arith.constant 0 : index
    %74 = vector.load %arg6[%c0_28, %c0_29] : memref<128x128xbf16, #tpu.memory_space<vmem>>, vector<128x128xbf16>
    %cst_30 = arith.constant dense<0.000000e+00> : vector<1x128xf32>
    %75 = tpu.matmul %73, %74, %cst_30 {dimension_numbers = #tpu.dot_dimension_numbers<[1], [0], [0], [1], [0, 0, 1, 1], [], []>} : vector<1x128xbf16>, vector<128x128xbf16>, vector<1x128xf32> -> vector<1x128xf32>
    %c0_31 = arith.constant 0 : index
    %c0_32 = arith.constant 0 : index
    %76 = vector.load %arg7[%c0_31, %c0_32] : memref<1x128xf32, #tpu.memory_space<vmem>>, vector<1x128xf32>
    %77 = arith.addf %75, %76 : vector<1x128xf32>
    %78 = arith.mulf %77, %77 : vector<1x128xf32>
    %79 = arith.mulf %77, %78 : vector<1x128xf32>
    %cst_33 = arith.constant 4.471500e-02 : f32
    %80 = vector.broadcast %cst_33 : f32 to vector<1x128xf32>
    %81 = arith.mulf %80, %79 : vector<1x128xf32>
    %82 = arith.addf %77, %81 : vector<1x128xf32>
    %cst_34 = arith.constant 0.797884583 : f32
    %83 = vector.broadcast %cst_34 : f32 to vector<1x128xf32>
    %84 = arith.mulf %83, %82 : vector<1x128xf32>
    %85 = math.tanh %84 : vector<1x128xf32>
    %cst_35 = arith.constant 1.000000e+00 : f32
    %86 = vector.broadcast %cst_35 : f32 to vector<1x128xf32>
    %87 = arith.addf %86, %85 : vector<1x128xf32>
    %cst_36 = arith.constant 5.000000e-01 : f32
    %88 = vector.broadcast %cst_36 : f32 to vector<1x128xf32>
    %89 = arith.mulf %88, %87 : vector<1x128xf32>
    %90 = arith.mulf %77, %89 : vector<1x128xf32>
    %91 = arith.truncf %90 : vector<1x128xf32> to vector<1x128xbf16>
    %c0_37 = arith.constant 0 : index
    %c0_38 = arith.constant 0 : index
    %92 = vector.load %arg8[%c0_37, %c0_38] : memref<128x128xbf16, #tpu.memory_space<vmem>>, vector<128x128xbf16>
    %cst_39 = arith.constant dense<0.000000e+00> : vector<1x128xf32>
    %93 = tpu.matmul %91, %92, %cst_39 {dimension_numbers = #tpu.dot_dimension_numbers<[1], [0], [0], [1], [0, 0, 1, 1], [], []>} : vector<1x128xbf16>, vector<128x128xbf16>, vector<1x128xf32> -> vector<1x128xf32>
    %c0_40 = arith.constant 0 : index
    %c0_41 = arith.constant 0 : index
    %94 = vector.load %arg9[%c0_40, %c0_41] : memref<1x128xf32, #tpu.memory_space<vmem>>, vector<1x128xf32>
    %95 = arith.addf %93, %94 : vector<1x128xf32>
    %96 = arith.addf %72, %95 : vector<1x128xf32>
    %c0_42 = arith.constant 0 : index
    %c0_43 = arith.constant 0 : index
    %97 = vector.load %arg12[%c0_42, %c0_43] : memref<1x128xf32, #tpu.memory_space<vmem>>, vector<1x128xf32>
    %c0_44 = arith.constant 0 : index
    %c0_45 = arith.constant 0 : index
    %98 = vector.load %arg13[%c0_44, %c0_45] : memref<1x128xf32, #tpu.memory_space<vmem>>, vector<1x128xf32>
    %cst_46 = arith.constant dense<0.000000e+00> : vector<1xf32>
    %99 = vector.multi_reduction <add>, %96, %cst_46 [1] : vector<1x128xf32> to vector<1xf32>
    %100 = vector.shape_cast %99 : vector<1xf32> to vector<1x1xf32>
    %cst_47 = arith.constant 3.125000e-02 : f32
    %101 = vector.broadcast %cst_47 : f32 to vector<1x1xf32>
    %102 = arith.mulf %100, %101 : vector<1x1xf32>
    %103 = vector.broadcast %102 : vector<1x1xf32> to vector<1x128xf32>
    %104 = arith.subf %96, %103 : vector<1x128xf32>
    %105 = arith.mulf %104, %8 : vector<1x128xf32>
    %106 = arith.mulf %105, %105 : vector<1x128xf32>
    %cst_48 = arith.constant dense<0.000000e+00> : vector<1xf32>
    %107 = vector.multi_reduction <add>, %106, %cst_48 [1] : vector<1x128xf32> to vector<1xf32>
    %108 = vector.shape_cast %107 : vector<1xf32> to vector<1x1xf32>
    %cst_49 = arith.constant 3.125000e-02 : f32
    %109 = vector.broadcast %cst_49 : f32 to vector<1x1xf32>
    %110 = arith.mulf %108, %109 : vector<1x1xf32>
    %cst_50 = arith.constant 9.99999996E-13 : f32
    %111 = vector.broadcast %cst_50 : f32 to vector<1x1xf32>
    %112 = arith.addf %110, %111 : vector<1x1xf32>
    %113 = math.rsqrt %112 : vector<1x1xf32>
    %114 = vector.broadcast %113 : vector<1x1xf32> to vector<1x128xf32>
    %115 = arith.mulf %104, %114 : vector<1x128xf32>
    %116 = arith.mulf %115, %97 : vector<1x128xf32>
    %117 = arith.addf %116, %98 : vector<1x128xf32>
    %118 = arith.truncf %117 : vector<1x128xf32> to vector<1x128xbf16>
    %c0_51 = arith.constant 0 : index
    %c0_52 = arith.constant 0 : index
    %119 = vector.load %arg14[%c0_51, %c0_52] : memref<128x128xbf16, #tpu.memory_space<vmem>>, vector<128x128xbf16>
    %cst_53 = arith.constant dense<0.000000e+00> : vector<1x128xf32>
    %120 = tpu.matmul %118, %119, %cst_53 {dimension_numbers = #tpu.dot_dimension_numbers<[1], [0], [0], [1], [0, 0, 1, 1], [], []>} : vector<1x128xbf16>, vector<128x128xbf16>, vector<1x128xf32> -> vector<1x128xf32>
    %c0_54 = arith.constant 0 : index
    %c0_55 = arith.constant 0 : index
    %121 = vector.load %arg15[%c0_54, %c0_55] : memref<1x128xf32, #tpu.memory_space<vmem>>, vector<1x128xf32>
    %122 = arith.addf %120, %121 : vector<1x128xf32>
    %123 = tpu.iota {dimensions = array<i32: 1>} : vector<1x128xi32>
    %c4_i32 = arith.constant 4 : i32
    %124 = vector.broadcast %c4_i32 : i32 to vector<1x128xi32>
    %125 = arith.cmpi slt, %123, %124 : vector<1x128xi32>
    %cst_56 = arith.constant -1.000000e+30 : f32
    %126 = vector.broadcast %cst_56 : f32 to vector<1x128xf32>
    %127 = arith.select %125, %122, %126 : vector<1x128xi1>, vector<1x128xf32>
    %cst_57 = arith.constant dense<0xFF800000> : vector<1xf32>
    %128 = vector.multi_reduction <maximumf>, %127, %cst_57 [1] : vector<1x128xf32> to vector<1xf32>
    %129 = vector.shape_cast %128 : vector<1xf32> to vector<1x1xf32>
    %130 = vector.broadcast %129 : vector<1x1xf32> to vector<1x128xf32>
    %131 = arith.subf %127, %130 : vector<1x128xf32>
    %132 = math.exp %131 : vector<1x128xf32>
    %cst_58 = arith.constant dense<0.000000e+00> : vector<1xf32>
    %133 = vector.multi_reduction <add>, %132, %cst_58 [1] : vector<1x128xf32> to vector<1xf32>
    %134 = vector.shape_cast %133 : vector<1xf32> to vector<1x1xf32>
    %135 = vector.broadcast %134 : vector<1x1xf32> to vector<1x128xf32>
    %136 = arith.divf %132, %135 : vector<1x128xf32>
    %c0_59 = arith.constant 0 : index
    %c0_60 = arith.constant 0 : index
    %c0_61 = arith.constant 0 : index
    %137 = vector.load %arg16[%c0_59, %c0_60, %c0_61] : memref<1x1x128xf32, #tpu.memory_space<vmem>>, vector<1x1x128xf32>
    %138 = vector.shape_cast %137 : vector<1x1x128xf32> to vector<1x128xf32>
    %139 = vector.shape_cast %136 : vector<1x128xf32> to vector<1x1x128xf32>
    tpu.vector_store %arg16[%c0_59, %c0_60, %c0_61], %139 {strides = array<i32>} : memref<1x1x128xf32, #tpu.memory_space<vmem>>, vector<1x1x128xf32>,
    return
  }
  func.func @transform_0(%arg0: i32) -> (i32, i32, i32) {
    %c0_i32 = arith.constant 0 : i32
    %c0_i32_0 = arith.constant 0 : i32
    %c0_i32_1 = arith.constant 0 : i32
    return %arg0, %c0_i32, %c0_i32_0 : i32, i32, i32
  }
  func.func @transform_1(%arg0: i32) -> (i32, i32, i32) {
    %c0_i32 = arith.constant 0 : i32
    %c0_i32_0 = arith.constant 0 : i32
    %c0_i32_1 = arith.constant 0 : i32
    return %arg0, %c0_i32, %c0_i32_0 : i32, i32, i32
  }
  func.func @transform_2(%arg0: i32) -> (i32, i32) {
    %c0_i32 = arith.constant 0 : i32
    %c0_i32_0 = arith.constant 0 : i32
    %c0_i32_1 = arith.constant 0 : i32
    return %c0_i32, %c0_i32_0 : i32, i32
  }
  func.func @transform_3(%arg0: i32) -> (i32, i32) {
    %c0_i32 = arith.constant 0 : i32
    %c0_i32_0 = arith.constant 0 : i32
    %c0_i32_1 = arith.constant 0 : i32
    return %c0_i32, %c0_i32_0 : i32, i32
  }
  func.func @transform_4(%arg0: i32) -> (i32, i32) {
    %c0_i32 = arith.constant 0 : i32
    %c0_i32_0 = arith.constant 0 : i32
    %c0_i32_1 = arith.constant 0 : i32
    return %c0_i32, %c0_i32_0 : i32, i32
  }
  func.func @transform_5(%arg0: i32) -> (i32, i32) {
    %c0_i32 = arith.constant 0 : i32
    %c0_i32_0 = arith.constant 0 : i32
    %c0_i32_1 = arith.constant 0 : i32
    return %c0_i32, %c0_i32_0 : i32, i32
  }
  func.func @transform_6(%arg0: i32) -> (i32, i32) {
    %c0_i32 = arith.constant 0 : i32
    %c0_i32_0 = arith.constant 0 : i32
    %c0_i32_1 = arith.constant 0 : i32
    return %c0_i32, %c0_i32_0 : i32, i32
  }
  func.func @transform_7(%arg0: i32) -> (i32, i32) {
    %c0_i32 = arith.constant 0 : i32
    %c0_i32_0 = arith.constant 0 : i32
    %c0_i32_1 = arith.constant 0 : i32
    return %c0_i32, %c0_i32_0 : i32, i32
  }
  func.func @transform_8(%arg0: i32) -> (i32, i32) {
    %c0_i32 = arith.constant 0 : i32
    %c0_i32_0 = arith.constant 0 : i32
    %c0_i32_1 = arith.constant 0 : i32
    return %c0_i32, %c0_i32_0 : i32, i32
  }
  func.func @transform_9(%arg0: i32) -> (i32, i32) {
    %c0_i32 = arith.constant 0 : i32
    %c0_i32_0 = arith.constant 0 : i32
    %c0_i32_1 = arith.constant 0 : i32
    return %c0_i32, %c0_i32_0 : i32, i32
  }
  func.func @transform_10(%arg0: i32) -> (i32, i32) {
    %c0_i32 = arith.constant 0 : i32
    %c0_i32_0 = arith.constant 0 : i32
    %c0_i32_1 = arith.constant 0 : i32
    return %c0_i32, %c0_i32_0 : i32, i32
  }
  func.func @transform_11(%arg0: i32) -> (i32, i32) {
    %c0_i32 = arith.constant 0 : i32
    %c0_i32_0 = arith.constant 0 : i32
    %c0_i32_1 = arith.constant 0 : i32
    return %c0_i32, %c0_i32_0 : i32, i32
  }
  func.func @transform_12(%arg0: i32) -> (i32, i32) {
    %c0_i32 = arith.constant 0 : i32
    %c0_i32_0 = arith.constant 0 : i32
    %c0_i32_1 = arith.constant 0 : i32
    return %c0_i32, %c0_i32_0 : i32, i32
  }
  func.func @transform_13(%arg0: i32) -> (i32, i32) {
    %c0_i32 = arith.constant 0 : i32
    %c0_i32_0 = arith.constant 0 : i32
    %c0_i32_1 = arith.constant 0 : i32
    return %c0_i32, %c0_i32_0 : i32, i32
  }
  func.func @transform_14(%arg0: i32) -> (i32, i32) {
    %c0_i32 = arith.constant 0 : i32
    %c0_i32_0 = arith.constant 0 : i32
    %c0_i32_1 = arith.constant 0 : i32
    return %c0_i32, %c0_i32_0 : i32, i32
  }
  func.func @transform_15(%arg0: i32) -> (i32, i32, i32) {
    %c0_i32 = arith.constant 0 : i32
    %c0_i32_0 = arith.constant 0 : i32
    %c0_i32_1 = arith.constant 0 : i32
    return %arg0, %c0_i32, %c0_i32_0 : i32, i32, i32
  }
}

</mosaic_0001>

<bundles_post_ra>
// kernel: _forward.1
= control target key start
LH: loop header
LB: loop body
LE: loop exit
PB: predicated region body
PF: predicated region fallthrough
CT: control target
= control target key end

     0   :  { %s2560_s0 = inlined_call_operand.vmem [shape: bf16[2,128,128], index: 0, kind: input, shape index: {}]   ;;  %s2561_s1 = inlined_call_operand.vmem [shape: f32[2,1,128], index: 1, kind: input, shape index: {}]   ;;  %s2562_s2 = inlined_call_operand.vmem [shape: bf16[128,128], index: 2, kind: input, shape index: {}]   ;;  %s2563_s3 = inlined_call_operand.vmem [shape: bf16[128,256], index: 3, kind: input, shape index: {}]   ;;  %s2564_s4 = inlined_call_operand.hbm [shape: bf16[128,128], index: 4, kind: input, shape index: {}]   ;;  %s2565_s5 = inlined_call_operand.hbm [shape: bf16[128,128], index: 5, kind: input, shape index: {}]   ;;  %s2566_s6 = inlined_call_operand.vmem [shape: f32[1,128], index: 6, kind: input, shape index: {}]   ;;  %s2567_s7 = inlined_call_operand.hbm [shape: bf16[128,128], index: 7, kind: input, shape index: {}]   ;;  %s2568_s8 = inlined_call_operand.vmem [shape: f32[1,128], index: 8, kind: input, shape index: {}]   ;;  %s2569_s9 = inlined_call_operand.vmem [shape: f32[1,128], index: 9, kind: input, shape index: {}]   ;;  %s2570_s10 = inlined_call_operand.vmem [shape: f32[1,128], index: 10, kind: input, shape index: {}]   ;;  %s2571_s11 = inlined_call_operand.vmem [shape: f32[1,128], index: 11, kind: input, shape index: {}]   ;;  %s2572_s12 = inlined_call_operand.vmem [shape: f32[1,128], index: 12, kind: input, shape index: {}]   ;;  %s2573_s13 = inlined_call_operand.hbm [shape: bf16[128,128], index: 13, kind: input, shape index: {}]   ;;  %s2574_s14 = inlined_call_operand.vmem [shape: f32[1,128], index: 14, kind: input, shape index: {}]   ;;  %s2575_s15 = inlined_call_operand.hbm [shape: f32[2,1,128], index: 15, kind: output, shape index: {}]  }
   0x1   :  { %2586 = sst [smem:[#allocation23_spill]] %s2564_s4 }
   0x2   :  { %2587 = sst [smem:[#allocation24_spill]] %s2565_s5 }
   0x3   :  { %2588 = sst [smem:[#allocation25_spill]] %s2575_s15 }
   0x4   :  { %20 = vsyncpa [#allocation3], 0 }
   0x5   :  { %21 = vsyncpa [#allocation6], 0 }
   0x6   :  { %22 = vsyncpa [#allocation9], 0 }
   0x7   :  { %23 = vsyncpa [#allocation4], 0 }
   0x8   :  { %25 = vsyncpa [#allocation4 + $0x1], 0  ;;  %s2223_s18 = smov 0   ;;  %s2225_s19 = smov 0  }
   0x9   :  { %s2227_s20 = smov 0   ;;  %s2229_s21 = smov 0  }
   0xa LB: > { %2589 = sst [smem:[#allocation15_spill]] %s2122_s18  ;;  %s2244_s22 = sadd.s32 4294967295, %s2134_s21   ;;  %s2134_s21 = sphi %s2229_s21, %s2609_s21   ;;  %s2130_s20 = sphi %s2227_s20, %s2612_s20   ;;  %s2126_s19 = sphi %s2225_s19, %s2611_s19   ;;  %s2122_s18 = sphi %s2223_s18, %s2610_s18  }
   0xb   : > { %2590 = sst [smem:[#allocation16_spill]] %s2126_s19  ;;  %s1505_s23 = sadd.s32 4294967294, %s2134_s21  }
   0xc   : > { %2591 = sst [smem:[#allocation17_spill]] %s2130_s20  ;;  %s2248_s24 = sadd.s32 1, %s2134_s21  }
   0xd   : > { %2592 = sst [smem:[#allocation18_spill]] %s2134_s21  ;;  %s363_s25 = sadd.s32 1, %s2130_s20 }
   0xe   : > { %2593 = sst [smem:[#allocation19_spill]] %s2248_s24  ;;  %s360_s26 = ssub.s32 %s2134_s21, %s2248_s24 }
   0xf   : > { %p373_p0 = scmp.ne.s32.totalorder %s2130_s20, %s2126_s19  ;;  %p361_p1 = scmp.eq.s32.totalorder %s360_s26, 0 }
  0x10   : > { %p374_p2 = scmp.eq.s32.totalorder %s2244_s22, 1  ;;  %p379_p3 = scmp.ne.s32.totalorder %s2126_s19, %s2122_s18 }
  0x11   : > { %p380_p4 = scmp.eq.s32.totalorder %s1505_s23, 1  ;;  %p1506_p7 = scmp.ge.s32.totalorder %s2134_s21, 1 }
  0x12   : > { %s2259_s27 = scalar_select %p361_p1, %s2130_s20, %s363_s25  }
  0x13   : > { %p2261_p5 = por %p374_p2, %p373_p0  ;;  %p2265_p6 = por %p380_p4, %p379_p3 }
  0x14   : > { %2594 = sst [smem:[#allocation20_spill]] %s2259_s27  ;;  %p387_p8 = scmp.lt.s32.totalorder %s2134_s21, 3 }
  0x15   : > { %s2595_s28 = scalar_select %p2261_p5, 1, 0 }
  0x16   : > { %s2597_s29 = scalar_select %p2265_p6, 1, 0 }
  0x17   : > { %2596 = sst [smem:[#allocation21_spill]] %s2595_s28  ;;  %p1878_p9 = scmp.eq.s32.totalorder %s2244_s22, 0 }
  0x18   : > { %2598 = sst [smem:[#allocation22_spill]] %s2597_s29  ;;  %p2272_p10 = pnand %p1506_p7, %p387_p8 }
  0x19   : > { %s2600_s5 = sld [smem:[#allocation24_spill]]  ;;  %s2136_s24 = smov [#allocation5]  }
  0x1a   : > { %p1861_p11 = pneg %p2272_p10  ;;  %s2601_s4 = sld [smem:[#allocation23_spill]] }
  0x1b   : > { %s420_s29 = sshll.u32 %s2136_s24, 4  ;;  %s2137_s16 = smov 64   ;;  %s421_s29 = int_to_ptr.vmem [resolvable:$true] %s420_s29 }
  0x1c   : > { %p2286_p12 = pnand %p1878_p9, %p1861_p11  ;;  %s2138_s17 = smov 4  }
  0x1d   : > { %s435_s18 = sshll.u32 %s2567_s7, 4  ;;  %s464_s28 = sshll.u32 %s2573_s13, 4  ;;  %s436_s18 = int_to_ptr.hbm [resolvable:$true] %s435_s18  ;;  %s465_s28 = int_to_ptr.hbm [resolvable:$true] %s464_s28 }
  0x1e   : > { %s2140_s15 = smov [#allocation7]  }
  0x1f   : > { %s418_s23 = sshll.u32 %s2600_s5, 4  ;;  %s2139_s5 = smov [#allocation2]   ;;  %s419_s23 = int_to_ptr.hbm [resolvable:$true] %s418_s23 }
  0x20   : > { %s404_s27 = sshll.u32 %s2601_s4, 4  ;;  %s406_s25 = sshll.u32 %s2139_s5, 4  ;;  %s405_s27 = int_to_ptr.hbm [resolvable:$true] %s404_s27  ;;  %s407_s25 = int_to_ptr.vmem [resolvable:$true] %s406_s25 }
  0x21   : > { %1867 = dma.hbm_to_vmem [thread:$0]  (!%p2286_p12), %s419_s23, 1024, %s421_s29, [#allocation6], %s2137_s16, %s2137_s16, %s2138_s17  }
  0x22   : > { %1864 = dma.hbm_to_vmem [thread:$0]  (!%p2286_p12), %s405_s27, 1024, %s407_s25, [#allocation3], %s2137_s16, %s2137_s16, %s2138_s17  }
  0x23   : > { %s437_s19 = sshll.u32 %s2140_s15, 4  ;;  %s2141_s29 = smov [#allocation8]   ;;  %s438_s19 = int_to_ptr.vmem [resolvable:$true] %s437_s19 }
  0x24   : > { %1870 = dma.hbm_to_vmem [thread:$0]  (!%p2286_p12), %s436_s18, 1024, %s438_s19, [#allocation6], %s2137_s16, %s2137_s16, %s2138_s17  }
  0x25   : > { %s466_s5 = sshll.u32 %s2141_s29, 4  ;;  %499 = sbr.rel (%p2272_p10) target bundleno = 2168 (0x878), region = 80  ;;  %s467_s5 = int_to_ptr.vmem [resolvable:$true] %s466_s5 }
  0x26   : > { %1873 = dma.hbm_to_vmem [thread:$0]  (!%p2286_p12), %s465_s28, 1024, %s467_s5, [#allocation9], %s2137_s16, %s2137_s16, %s2138_s17  }
  0x2a   : > { %2105 = dma.done.wait (%p1878_p9), [#allocation3], 1024  }
  0x2b   : > { %2107 = vsyncadd (%p1878_p9), [#allocation3], 4294966272 }
  0x2c   : > { %2109 = dma.done.wait (%p1878_p9), [#allocation6], 2048  }
  0x2d   : > { %2111 = vsyncadd (%p1878_p9), [#allocation6], 4294965248 }
  0x2e   : > { %2113 = dma.done.wait (%p1878_p9), [#allocation9], 1024  }
  0x2f   : > { %2115 = vsyncadd (%p1878_p9), [#allocation9], 4294966272  ;;  %v1610_v0 = vld [vmem:[%s2563_s3 + $0x70] sm:$0xf]  ;;  %v1802_v1 = vld [vmem:[%s2563_s3 + $0x74] sm:$0xf0] }
  0x30   : > { %v1602_v2 = vld [vmem:[%s2563_s3 + $0x60] sm:$0xf]  ;;  %v1611_v3 = vor.u32 %v1802_v1, %v1610_v0  ;;  %v1800_v4 = vld [vmem:[%s2563_s3 + $0x64] sm:$0xf0]  ;;  %v1594_v6 = vld [vmem:[%s2563_s3 + $0x50] sm:$0xf] }
  0x31   : > { %v1603_v5 = vor.u32 %v1800_v4, %v1602_v2  ;;  %v1798_v7 = vld [vmem:[%s2563_s3 + $0x54] sm:$0xf0]  ;;  %v1586_v9 = vld [vmem:[%s2563_s3 + $0x40] sm:$0xf]  ;;  %v1796_v10 = vld [vmem:[%s2563_s3 + $0x44] sm:$0xf0] }
  0x32   : > { %738 = vmatpush.bf16.msra.mxu0 %v1611_v3  ;;  %v1595_v8 = vor.u32 %v1798_v7, %v1594_v6  ;;  %v1587_v11 = vor.u32 %v1796_v10, %v1586_v9  ;;  %v1578_v12 = vld [vmem:[%s2563_s3 + $0x30] sm:$0xf]  ;;  %v1794_v13 = vld [vmem:[%s2563_s3 + $0x34] sm:$0xf0]  ;;  %v1570_v15 = vld [vmem:[%s2563_s3 + $0x20] sm:$0xf] }
  0x33   : > { %v1579_v14 = vor.u32 %v1794_v13, %v1578_v12  ;;  %v1792_v16 = vld [vmem:[%s2563_s3 + $0x24] sm:$0xf0]  ;;  %p565_p13 = scmp.lt.s32.totalorder %s2244_s22, 1  ;;  %v1562_v18 = vld [vmem:[%s2563_s3 + $0x10] sm:$0xf]  ;;  %v1810_v48 = vld [vmem:[%s2562_s2 + $0x38] sm:$0xff] }
  0x34   : > { %v1571_v17 = vor.u32 %v1792_v16, %v1570_v15  ;;  %v1790_v19 = vld [vmem:[%s2563_s3 + $0x14] sm:$0xf0]  ;;  %v1554_v21 = vld [vmem:[%s2563_s3] sm:$0xf]  ;;  %v1788_v22 = vld [vmem:[%s2563_s3 + $0x4] sm:$0xf0]  ;;  %900 = vmatpush.bf16.msra.mxu2 %v1810_v48 }
  0x35   : > { %s2362_s17 = scalar_select %p565_p13, %s2244_s22, 1  ;;  %v1563_v20 = vor.u32 %v1790_v19, %v1562_v18  ;;  %v1555_v23 = vor.u32 %v1788_v22, %v1554_v21  ;;  %v1801_v30 = vld [vmem:[%s2563_s3 + $0x74] sm:$0xf]  ;;  %v1612_v31 = vld [vmem:[%s2563_s3 + $0x78] sm:$0xf0]  ;;  %v1808_v58 = vld [vmem:[%s2562_s2 + $0x28] sm:$0xff] }
  0x36   : > { %739 = vmatpush.bf16.msra.mxu0 %v1603_v5  ;;  %v1799_v32 = vld [vmem:[%s2563_s3 + $0x64] sm:$0xf]  ;;  %v1615_v33 = vor.u32 %v1801_v30, %v1612_v31  ;;  %v1604_v34 = vld [vmem:[%s2563_s3 + $0x68] sm:$0xf0]  ;;  %v1797_v36 = vld [vmem:[%s2563_s3 + $0x54] sm:$0xf] }
  0x37   : > { %s1778_s5 = sshll.u32 %s2362_s17, 6  ;;  %v1607_v35 = vor.u32 %v1799_v32, %v1604_v34  ;;  %v1596_v37 = vld [vmem:[%s2563_s3 + $0x58] sm:$0xf0]  ;;  %v1795_v40 = vld [vmem:[%s2563_s3 + $0x44] sm:$0xf]  ;;  %v1809_v54 = vld [vmem:[%s2562_s2 + $0x30] sm:$0xff]  ;;  %s572_s28 = scalar_lea.vmem %s2561_s1, %s2362_s17 }
  0x38   : > { %s2374_s18 = scalar_lea.vmem %s2560_s0, %s1778_s5  ;;  %787 = vmatpush.bf16.msra.mxu1 %v1615_v33  ;;  %v1599_v39 = vor.u32 %v1797_v36, %v1596_v37  ;;  %v1588_v41 = vld [vmem:[%s2563_s3 + $0x48] sm:$0xf0]  ;;  %v1793_v43 = vld [vmem:[%s2563_s3 + $0x34] sm:$0xf]  ;;  %v1580_v44 = vld [vmem:[%s2563_s3 + $0x38] sm:$0xf0]  ;;  %901 = vmatpush.bf16.msra.mxu2 %v1809_v54 }
  0x39   : > { %v1779_v24 = vld [vmem:[%s2374_s18] sm:$0xff]  ;;  %v2378_v25 = vld [vmem:[%s2374_s18 + $0x8] sm:$0xff]  ;;  %v2382_v26 = vld [vmem:[%s2374_s18 + $0x10] sm:$0xff]  ;;  %v1591_v42 = vor.u32 %v1795_v40, %v1588_v41  ;;  %v1583_v45 = vor.u32 %v1793_v43, %v1580_v44  ;;  %vm945_vm3 = vcmask 1040384   ;;  %s2604_s30 = sld [smem:[#allocation25_spill]] }
  0x3a   : > { %740 = vmatpush.bf16.msra.mxu0 %v1595_v8  ;;  %v2386_v27 = vld [vmem:[%s2374_s18 + $0x18] sm:$0xff]  ;;  %v2390_v28 = vld [vmem:[%s2374_s18 + $0x20] sm:$0xff]  ;;  %v2394_v29 = vld [vmem:[%s2374_s18 + $0x28] sm:$0xff] }
  0x3b   : > { %v2416_v38 = vld [vmem:[%s2374_s18 + $0x30] sm:$0xff]  ;;  %v1791_v46 = vld [vmem:[%s2563_s3 + $0x24] sm:$0xf]  ;;  %v1572_v47 = vld [vmem:[%s2563_s3 + $0x28] sm:$0xf0] }
  0x3c   : > { %788 = vmatpush.bf16.msra.mxu1 %v1607_v35  ;;  %v1575_v49 = vor.u32 %v1791_v46, %v1572_v47  ;;  %v1789_v50 = vld [vmem:[%s2563_s3 + $0x14] sm:$0xf]  ;;  %v1564_v51 = vld [vmem:[%s2563_s3 + $0x18] sm:$0xf0]  ;;  %v1787_v55 = vld [vmem:[%s2563_s3 + $0x4] sm:$0xf]  ;;  %902 = vmatpush.bf16.msra.mxu2 %v1808_v58 }
  0x3d   : > { %v1786_v52 = vld [vmem:[%s2374_s18 + $0x38] sm:$0xff]  ;;  %v1567_v53 = vor.u32 %v1789_v50, %v1564_v51  ;;  %v1556_v56 = vld [vmem:[%s2563_s3 + $0x8] sm:$0xf0]  ;;  %v1807_v59 = vld [vmem:[%s2562_s2 + $0x20] sm:$0xff] }
  0x3e   : > { %741 = vmatpush.bf16.msra.mxu0 %v1587_v11  ;;  %v1559_v57 = vor.u32 %v1787_v55, %v1556_v56  ;;  %v1806_v60 = vld [vmem:[%s2562_s2 + $0x18] sm:$0xff]  ;;  %v1805_v61 = vld [vmem:[%s2562_s2 + $0x10] sm:$0xff]  ;;  %v1804_v63 = vld [vmem:[%s2562_s2 + $0x8] sm:$0xff] }
  0x3f   : > { %v1803_v0 = vld [vmem:[%s2562_s2] sm:$0xff]  ;;  %s1396_s23 = scalar_lea.hbm %s2604_s30, %s2244_s22  ;;  %s2080_s19 = scalar_lea.hbm %s2604_s30, 2 }
  0x40   : > { %789 = vmatpush.bf16.msra.mxu1 %v1599_v39  ;;  %903 = vmatpush.bf16.msra.mxu2 %v1807_v59  ;;  %v2476_v3 = vld [vmem:[%s2374_s18] sm:$0xf]  ;;  %s2603_s18 = sld [smem:[#allocation16_spill]]  ;;  %s1400_s24 = sshll.u32 %s1396_s23, 4  ;;  %s1401_s24 = int_to_ptr.hbm [resolvable:$true] %s1400_s24 }
  0x41   : > { %v922_v58 = vld [vmem:[%s572_s28] sm:$0x1]  ;;  %s2074_s5 = sshra.s32 %s1401_s24, 4  ;;  %s2075_s5 = int_to_ptr.hbm [resolvable:$true] %s2074_s5 }
  0x42   : > { %742 = vmatpush.bf16.msra.mxu0 %v1579_v14  ;;  %s2076_s4 = scalar_lea.hbm %s2075_s5, 1  ;;  %p2081_p3 = scmp.lt.s32.totalorder %s2075_s5, %s2604_s30 }
  0x43   : > { %p2077_p0 = scmp.ne.s32.totalorder %s2075_s5, %s2076_s4  ;;  %p2082_p4 = scmp.lt.s32.totalorder %s2080_s19, %s2076_s4 }
  0x44   : > { %790 = vmatpush.bf16.msra.mxu1 %v1591_v42  ;;  %904 = vmatpush.bf16.msra.mxu2 %v1806_v60 }
  0x45   : > { %p2078_p1 = pnand %p2077_p0, %p2261_p5  ;;  %p2083_p7 = por %p2082_p4, %p2081_p3 }
  0x46   : > { %743 = vmatpush.bf16.msra.mxu0 %v1571_v17  ;;  %s563_s27 = sand.u32 1, %s2603_s18  }
  0x47   : > { %s564_s25 = scalar_lea.vmem [#allocation10], %s563_s27  ;;  %s1388_s29 = scalar_lea.sflag [#allocation4], %s563_s27 }
  0x48   : > { %791 = vmatpush.bf16.msra.mxu1 %v1583_v45  ;;  %905 = vmatpush.bf16.msra.mxu2 %v1805_v61  ;;  %s1398_s26 = sshll.u32 %s564_s25, 4  ;;  %p2079_p2 = pneg %p2078_p1  ;;  %s1399_s26 = int_to_ptr.vmem [resolvable:$true] %s1398_s26 }
  0x4a   : > { %744 = vmatpush.bf16.msra.mxu0 %v1563_v20  ;;  %p2084_p8 = pnand %p2083_p7, %p2079_p2 }
  0x4c   : > { %792 = vmatpush.bf16.msra.mxu1 %v1575_v49  ;;  %906 = vmatpush.bf16.msra.mxu2 %v1804_v63 }
  0x4e   : > { %745 = vmatpush.bf16.msra.mxu0 %v1555_v23 }
  0x50   : > { %793 = vmatpush.bf16.msra.mxu1 %v1567_v53  ;;  %907 = vmatpush.bf16.msra.mxu2 %v1803_v0  ;;  %v1818_v0 = vld [vmem:[#allocation2 + $0x38] sm:$0xff] }
  0x51   : > { %746 = vmatmul.bf16.vlgmr.msra.gmra.mxu0 %v1779_v24 }
  0x53   : > { %908 = vmatmul.bf16.vlgmr.msra.gmra.mxu2 %v2476_v3 }
  0x54   : > { %794 = vmatpush.bf16.msra.mxu1 %v1559_v57 }
  0x57   : > { %795 = vmatmul.bf16.vlgmr.msra.gmra.mxu1 %v1779_v24 }
  0x61   : > { %751 = vmatmul.bf16.gmra.mxu0 %v2378_v25 }
  0x67   : > { %800 = vmatmul.bf16.gmra.mxu1 %v2378_v25 }
  0x71   : > { %756 = vmatmul.bf16.gmra.mxu0 %v2382_v26 }
  0x77   : > { %805 = vmatmul.bf16.gmra.mxu1 %v2382_v26 }
  0x81   : > { %761 = vmatmul.bf16.gmra.mxu0 %v2386_v27 }
  0x87   : > { %810 = vmatmul.bf16.gmra.mxu1 %v2386_v27 }
  0x91   : > { %766 = vmatmul.bf16.gmra.mxu0 %v2390_v28 }
  0x97   : > { %815 = vmatmul.bf16.gmra.mxu1 %v2390_v28 }
  0xa1   : > { %771 = vmatmul.bf16.gmra.mxu0 %v2394_v29 }
  0xa7   : > { %820 = vmatmul.bf16.gmra.mxu1 %v2394_v29 }
  0xb1   : > { %776 = vmatmul.bf16.gmra.mxu0 %v2416_v38 }
  0xb7   : > { %825 = vmatmul.bf16.gmra.mxu1 %v2416_v38 }
  0xc1   : > { %781 = vmatmul.bf16.gmra.mxu0 %v1786_v52 }
  0xc7   : > { %830 = vmatmul.bf16.gmra.mxu1 %v1786_v52  ;;  %v589_v52 = vlaneseq }
  0xc9   : > { %v937_v53 = vshrl.u32 %v589_v52, 7  ;;  %v2484_v55 = vand.u32 127, %v589_v52  ;;  %v1059_v52 = vld [vmem:[%s2569_s9] sm:$0x1] }
  0xcb   : > { %v940_v54 = vadd.s32 1, %v937_v53  ;;  %v938_v56 = vmul.u32 128, %v937_v53  ;;  %vm591_vm4 = vcmp.lt.s32.totalorder %v2484_v55, 32  ;;  %vm1360_vm11 = vcmp.lt.s32.totalorder %v2484_v55, 4 }
  0xcd   : > { %v941_v57 = vmul.u32 128, %v940_v54  ;;  %vm939_vm0 = vcmp.ge.s32.totalorder %v2484_v55, %v938_v56  ;;  %v1060_v54 = vld [vmem:[%s2570_s10] sm:$0x1] }
  0xce   : > { %v747_v62 = vpop.f32.mrf.mxu0 }
  0xcf   : > { %vm942_vm1 = vcmp.lt.s32.totalorder %v2484_v55, %v941_v57 }
  0xd0   : > { %vm943_vm2 = vmand %vm939_vm0, %vm942_vm1 }
  0xd4   : > { %v796_v21 = vpop.f32.mrf.mxu1 }
  0xd6   : > { %v749_v1 = vpop.f32.mrf.mxu0  ;;  %v909_v31 = vpop.f32.mrf.mxu2 }
  0xd7   : > { %v914_v2 = vpack.c.bf16 %v749_v1, %v747_v62  ;;  %v913_v40 = vpack.c.bf16 %v909_v31, %v909_v31  ;;  %v1817_v1 = vld [vmem:[#allocation2 + $0x30] sm:$0xff] }
  0xdc   : > { %v798_v24 = vpop.f32.mrf.mxu1 }
  0xdd   : > { %v956_v25 = vpack.c.bf16 %v798_v24, %v796_v21  ;;  %v1057_v21 = vunpack.c.l.bf16 %v2476_v3 }
  0xde   : > { %v752_v4 = vpop.f32.mrf.mxu0  ;;  %v911_v33 = vpop.f32.mrf.mxu2 }
  0xe4   : > { %v801_v27 = vpop.f32.mrf.mxu1 }
  0xe6   : > { %v754_v5 = vpop.f32.mrf.mxu0 }
  0xe7   : > { %v915_v6 = vpack.c.bf16 %v754_v5, %v752_v4 }
  0xec   : > { %v803_v29 = vpop.f32.mrf.mxu1 }
  0xed   : > { %v957_v30 = vpack.c.bf16 %v803_v29, %v801_v27  ;;  %v2142_v29 = vmov 0.0  }
  0xee   : > { %v757_v7 = vpop.f32.mrf.mxu0 }
  0xf4   : > { %v806_v32 = vpop.f32.mrf.mxu1 }
  0xf6   : > { %v759_v8 = vpop.f32.mrf.mxu0 }
  0xf7   : > { %v916_v9 = vpack.c.bf16 %v759_v8, %v757_v7 }
  0xfc   : > { %v808_v34 = vpop.f32.mrf.mxu1 }
  0xfd   : > { %v958_v35 = vpack.c.bf16 %v808_v34, %v806_v32  ;;  %v1825_v34 = vld [vmem:[#allocation5 + $0x30] sm:$0xff] }
  0xfe   : > { %v762_v10 = vpop.f32.mrf.mxu0 }
 0x104   : > { %v811_v36 = vpop.f32.mrf.mxu1 }
 0x106   : > { %v764_v11 = vpop.f32.mrf.mxu0 }
 0x107   : > { %v917_v12 = vpack.c.bf16 %v764_v11, %v762_v10  ;;  %v1815_v10 = vld [vmem:[#allocation2 + $0x20] sm:$0xff]  ;;  %v1814_v11 = vld [vmem:[#allocation2 + $0x18] sm:$0xff] }
 0x10c   : > { %v813_v37 = vpop.f32.mrf.mxu1 }
 0x10d   : > { %v959_v38 = vpack.c.bf16 %v813_v37, %v811_v36  ;;  %v1823_v36 = vld [vmem:[#allocation5 + $0x20] sm:$0xff]  ;;  %v1822_v37 = vld [vmem:[#allocation5 + $0x18] sm:$0xff] }
 0x10e   : > { %v767_v13 = vpop.f32.mrf.mxu0 }
 0x114   : > { %v816_v39 = vpop.f32.mrf.mxu1 }
 0x116   : > { %v769_v14 = vpop.f32.mrf.mxu0 }
 0x117   : > { %v918_v15 = vpack.c.bf16 %v769_v14, %v767_v13  ;;  %v1812_v13 = vld [vmem:[#allocation2 + $0x8] sm:$0xff]  ;;  %v1811_v14 = vld [vmem:[#allocation2] sm:$0xff] }
 0x11c   : > { %v818_v41 = vpop.f32.mrf.mxu1 }
 0x11d   : > { %v960_v51 = vpack.c.bf16 %v818_v41, %v816_v39  ;;  %v1820_v39 = vld [vmem:[#allocation5 + $0x8] sm:$0xff]  ;;  %v1834_v41 = vld [vmem:[#allocation7 + $0x38] sm:$0xff] }
 0x11e   : > { %v772_v16 = vpop.f32.mrf.mxu0 }
 0x124   : > { %v821_v42 = vpop.f32.mrf.mxu1 }
 0x126   : > { %v774_v17 = vpop.f32.mrf.mxu0 }
 0x127   : > { %v919_v28 = vpack.c.bf16 %v774_v17, %v772_v16 }
 0x12c   : > { %v823_v43 = vpop.f32.mrf.mxu1 }
 0x12d   : > { %v961_v50 = vpack.c.bf16 %v823_v43, %v821_v42 }
 0x12e   : > { %v777_v18 = vpop.f32.mrf.mxu0 }
 0x134   : > { %v826_v44 = vpop.f32.mrf.mxu1 }
 0x136   : > { %v779_v19 = vpop.f32.mrf.mxu0 }
 0x137   : > { %v920_v26 = vpack.c.bf16 %v779_v19, %v777_v18 }
 0x13c   : > { %v828_v45 = vpop.f32.mrf.mxu1 }
 0x13d   : > { %v962_v49 = vpack.c.bf16 %v828_v45, %v826_v44 }
 0x13e   : > { %v782_v20 = vpop.f32.mrf.mxu0 }
 0x144   : > { %v831_v46 = vpop.f32.mrf.mxu1 }
 0x146   : > { %v784_v22 = vpop.f32.mrf.mxu0 }
 0x147   : > { %v921_v23 = vpack.c.bf16 %v784_v22, %v782_v20 }
 0x149   : > { %923 = vmatpush.bf16.xpose.msra.mxu3 %v921_v23 }
 0x14c   : > { %v833_v47 = vpop.f32.mrf.mxu1 }
 0x14d   : > { %v963_v48 = vpack.c.bf16 %v833_v47, %v831_v46 }
 0x14f   : > { %964 = vmatpush.bf16.msrb.mxu2 %v963_v48 }
 0x151   : > { %924 = vmatpush.bf16.xpose.msra.mxu3 %v920_v26  ;;  %v1826_v26 = vld [vmem:[#allocation5 + $0x38] sm:$0xff] }
 0x153   : > { %965 = vmatpush.bf16.msrb.mxu2 %v962_v49 }
 0x157   : > { %966 = vmatpush.bf16.msrb.mxu2 %v961_v50 }
 0x159   : > { %925 = vmatpush.bf16.xpose.msra.mxu3 %v919_v28 }
 0x15b   : > { %967 = vmatpush.bf16.msrb.mxu2 %v960_v51 }
 0x15f   : > { %968 = vmatpush.bf16.msrb.mxu2 %v959_v38  ;;  %v1821_v38 = vld [vmem:[#allocation5 + $0x10] sm:$0xff] }
 0x161   : > { %926 = vmatpush.bf16.xpose.msra.mxu3 %v918_v15 }
 0x163   : > { %969 = vmatpush.bf16.msrb.mxu2 %v958_v35  ;;  %v1824_v35 = vld [vmem:[#allocation5 + $0x28] sm:$0xff] }
 0x167   : > { %970 = vmatpush.bf16.msrb.mxu2 %v957_v30  ;;  %v2497_v30 = vsel %vm591_vm4, 1.0, %v2142_v29 }
 0x169   : > { %927 = vmatpush.bf16.xpose.msra.mxu3 %v917_v12  ;;  %v1813_v12 = vld [vmem:[#allocation2 + $0x10] sm:$0xff] }
 0x16b   : > { %971 = vmatpush.bf16.msrb.mxu2 %v956_v25 }
 0x16f   : > { %1044 = vmatpush.bf16.msra.mxu2 %v1818_v0  ;;  %v1828_v0 = vld [vmem:[#allocation7 + $0x8] sm:$0xff] }
 0x171   : > { %928 = vmatpush.bf16.xpose.msra.mxu3 %v916_v9 }
 0x173   : > { %1045 = vmatpush.bf16.msra.mxu2 %v1817_v1  ;;  %v1827_v1 = vld [vmem:[#allocation7] sm:$0xff] }
 0x179   : > { %929 = vmatpush.bf16.xpose.msra.mxu3 %v915_v6 }
 0x181   : > { %930 = vmatpush.bf16.xpose.msra.mxu3 %v914_v2  ;;  %v1816_v2 = vld [vmem:[#allocation2 + $0x28] sm:$0xff] }
 0x182   : > { %1046 = vmatpush.bf16.msra.mxu2 %v1816_v2  ;;  %v1103_v2 = vld [vmem:[%s2566_s6] sm:$0x1] }
 0x186   : > { %1047 = vmatpush.bf16.msra.mxu2 %v1815_v10 }
 0x188   : > { %931 = vmatmul.bf16.vlgmr.msra.gmra.mxu3 %v913_v40  ;;  %v1819_v40 = vld [vmem:[#allocation5] sm:$0xff] }
 0x189   : > { %1152 = vmatpush.bf16.msrb.mxu3 %v1826_v26 }
 0x18a   : > { %1048 = vmatpush.bf16.msra.mxu2 %v1814_v11 }
 0x18d   : > { %1153 = vmatpush.bf16.msrb.mxu3 %v1825_v34  ;;  %v1837_v34 = vld [vmem:[#allocation8 + $0x10] sm:$0xff] }
 0x18e   : > { %1049 = vmatpush.bf16.msra.mxu2 %v1813_v12 }
 0x191   : > { %1154 = vmatpush.bf16.msrb.mxu3 %v1824_v35  ;;  %v1836_v35 = vld [vmem:[#allocation8 + $0x8] sm:$0xff] }
 0x192   : > { %1050 = vmatpush.bf16.msra.mxu2 %v1812_v13 }
 0x195   : > { %1155 = vmatpush.bf16.msrb.mxu3 %v1823_v36  ;;  %v1835_v36 = vld [vmem:[#allocation8] sm:$0xff] }
 0x196   : > { %1051 = vmatpush.bf16.msra.mxu2 %v1811_v14 }
 0x199   : > { %1156 = vmatpush.bf16.msrb.mxu3 %v1822_v37 }
 0x19d   : > { %1157 = vmatpush.bf16.msrb.mxu3 %v1821_v38 }
 0x1a1   : > { %1158 = vmatpush.bf16.msrb.mxu3 %v1820_v39 }
 0x1a5   : > { %1159 = vmatpush.bf16.msrb.mxu3 %v1819_v40 }
 0x20b   : > { %v932_v59 = vpop.f32.mrf.mxu3 }
 0x20c   : > { %v933_v60 = vadd.f32 %v932_v59, %v922_v58  ;;  %v1833_v59 = vld [vmem:[#allocation7 + $0x30] sm:$0xff] }
 0x20e   : > { %v944_v61 = vsel %vm943_vm2, %v933_v60, -1e+30  ;;  %v1832_v60 = vld [vmem:[#allocation7 + $0x28] sm:$0xff] }
 0x20f   : > { %v946_v62 = vsel %vm945_vm3, %v944_v61, -inf }
 0x210   : > { %947 = vmax.xlane.f32.xlu0 %v946_v62  ;;  %v1830_v62 = vld [vmem:[#allocation7 + $0x18] sm:$0xff] }
 0x213   : > { %v934_v63 = vpop.f32.mrf.mxu3 }
 0x214   : > { %v1829_v63 = vld [vmem:[#allocation7 + $0x10] sm:$0xff] }
 0x283   : > { %v948_v4 = vpop.xlane.xlu0 %947 }
 0x284   : > { %v949_v5 = vsub.f32 %v944_v61, %v948_v4  ;;  %v1831_v61 = vld [vmem:[#allocation7 + $0x20] sm:$0xff] }
 0x286   : > { %v950_v6 = vmul.f32 1.442695, %v949_v5 }
 0x288   : > { %1926 = vpow2.f32 %v950_v6 }
 0x28e   : > { %v1927_v7 = vpop.eup %1926 }
 0x28f   : > { %v952_v8 = vsel %vm945_vm3, %v1927_v7, 0.0  ;;  %v955_v9 = vpack.c.bf16 %v1927_v7, %v1927_v7 }
 0x290   : > { %953 = vadd.xlane.f32.xlu0 %v952_v8 }
 0x291   : > { %972 = vmatmul.bf16.vlgmr.msrb.gmra.mxu2 %v955_v9 }
 0x292   : > { %1240 = vmatpush.bf16.msrb.mxu2 %v1834_v41 }
 0x296   : > { %1241 = vmatpush.bf16.msrb.mxu2 %v1833_v59 }
 0x29a   : > { %1242 = vmatpush.bf16.msrb.mxu2 %v1832_v60 }
 0x29e   : > { %1243 = vmatpush.bf16.msrb.mxu2 %v1831_v61 }
 0x2a2   : > { %1244 = vmatpush.bf16.msrb.mxu2 %v1830_v62 }
 0x2a6   : > { %1245 = vmatpush.bf16.msrb.mxu2 %v1829_v63 }
 0x2aa   : > { %1246 = vmatpush.bf16.msrb.mxu2 %v1828_v0 }
 0x2ae   : > { %1247 = vmatpush.bf16.msrb.mxu2 %v1827_v1 }
 0x303   : > { %v954_v15 = vpop.xlane.xlu0 %953 }
 0x304   : > { %1928 = vrcp.f32 %v954_v15 }
 0x30a   : > { %v1929_v16 = vpop.eup %1928 }
 0x314   : > { %v973_v17 = vpop.f32.mrf.mxu2 }
 0x315   : > { %v978_v18 = vmul.f32 %v1929_v16, %v973_v17  ;;  %v1191_v17 = vld [vmem:[%s2568_s8] sm:$0x1] }
 0x317   : > { %v979_v19 = vpack.c.bf16 %v978_v18, %v978_v18 }
 0x319   : > { %1052 = vmatmul.bf16.vlgmr.msra.gmra.mxu2 %v979_v19 }
 0x31c   : > { %v975_v20 = vpop.f32.mrf.mxu2 }
 0x39c   : > { %v1053_v22 = vpop.f32.mrf.mxu2 }
 0x39d   : > { %v1058_v23 = vadd.f32 %v1057_v21, %v1053_v22 }
 0x39f   : > { %v1061_v24 = vsel %vm945_vm3, %v1058_v23, 0.0 }
 0x3a0   : > { %1062 = vadd.xlane.f32.xlu1 %v1061_v24 }
 0x3a4   : > { %v1055_v25 = vpop.f32.mrf.mxu2 }
 0x413   : > { %v1063_v27 = vpop.xlane.xlu1 %1062 }
 0x414   : > { %v1064_v28 = vmul.f32 0.03125, %v1063_v27 }
 0x416   : > { %v1065_v31 = vsub.f32 %v1058_v23, %v1064_v28  ;;  %v1842_v23 = vld [vmem:[#allocation8 + $0x38] sm:$0xff] }
 0x417   : > { %1347 = vmatpush.bf16.msra.mxu3 %v1842_v23 }
 0x418   : > { %v1066_v32 = vmul.f32 %v2497_v30, %v1065_v31 }
 0x41a   : > { %v1067_v33 = vmul.f32 %v1066_v32, %v1066_v32  ;;  %v1840_v32 = vld [vmem:[#allocation8 + $0x28] sm:$0xff] }
 0x41c   : > { %v1068_v3 = vsel %vm945_vm3, %v1067_v33, 0.0  ;;  %v1839_v33 = vld [vmem:[#allocation8 + $0x20] sm:$0xff] }
 0x41d   : > { %1069 = vadd.xlane.f32.xlu1 %v1068_v3  ;;  %v1838_v3 = vld [vmem:[#allocation8 + $0x18] sm:$0xff] }
 0x490   : > { %v1070_v42 = vpop.xlane.xlu1 %1069 }
 0x491   : > { %v1071_v43 = vmul.f32 0.03125, %v1070_v42 }
 0x493   : > { %v1072_v44 = vadd.f32 1e-12, %v1071_v43 }
 0x495   : > { %1930 = vrsqrt.f32 %v1072_v44  ;;  %vm1079_vm6 = vweird.f32 %v1072_v44 }
 0x49b   : > { %v1931_v45 = vpop.eup %1930 }
 0x49c   : > { %v1074_v46 = vmul.f32 %v1931_v45, %v1072_v44  ;;  %vm1080_vm5 = vweird.f32 %v1931_v45 }
 0x49d   : > { %vm1081_vm7 = vmor %vm1079_vm6, %vm1080_vm5 }
 0x49e   : > { %v1075_v47 = vmul.f32 %v1931_v45, %v1074_v46  ;;  %v1254_v46 = vld [vmem:[%s2571_s11] sm:$0x1] }
 0x4a0   : > { %v1076_v48 = vmul.f32 0.5, %v1075_v47 }
 0x4a2   : > { %v1077_v49 = vsub.f32 1.5, %v1076_v48  ;;  %v1255_v48 = vld [vmem:[%s2572_s12] sm:$0x1] }
 0x4a4   : > { %v1078_v50 = vmul.f32 %v1931_v45, %v1077_v49 }
 0x4a6   : > { %v1082_v51 = vsel %vm1081_vm7, %v1931_v45, %v1078_v50 }
 0x4a7   : > { %v1083_v53 = vmul.f32 %v1082_v51, %v1065_v31  ;;  %v1841_v31 = vld [vmem:[#allocation8 + $0x30] sm:$0xff] }
 0x4a8   : > { %1348 = vmatpush.bf16.msra.mxu3 %v1841_v31 }
 0x4a9   : > { %v1084_v56 = vmul.f32 %v1083_v53, %v1059_v52  ;;  %v1298_v52 = vld [vmem:[%s2574_s14] sm:$0x1] }
 0x4ab   : > { %v1085_v57 = vadd.f32 %v1084_v56, %v1060_v54 }
 0x4ac   : > { %1349 = vmatpush.bf16.msra.mxu3 %v1840_v32 }
 0x4ad   : > { %v1086_v58 = vpack.c.bf16 %v1085_v57, %v1085_v57 }
 0x4af   : > { %1160 = vmatmul.bf16.vlgmr.msrb.gmra.mxu3 %v1086_v58 }
 0x4b0   : > { %1350 = vmatpush.bf16.msra.mxu3 %v1839_v33 }
 0x4b4   : > { %1351 = vmatpush.bf16.msra.mxu3 %v1838_v3 }
 0x4b8   : > { %1352 = vmatpush.bf16.msra.mxu3 %v1837_v34 }
 0x4bc   : > { %1353 = vmatpush.bf16.msra.mxu3 %v1836_v35 }
 0x4c0   : > { %1354 = vmatpush.bf16.msra.mxu3 %v1835_v36 }
 0x532   : > { %v1161_v4 = vpop.f32.mrf.mxu3 }
 0x533   : > { %v1162_v5 = vadd.f32 %v1161_v4, %v1103_v2 }
 0x535   : > { %v1165_v6 = vmul.f32 %v1162_v5, %v1162_v5 }
 0x537   : > { %v1166_v7 = vmul.f32 %v1165_v6, %v1162_v5 }
 0x539   : > { %v1167_v8 = vmul.f32 0.044715, %v1166_v7 }
 0x53a   : > { %v1163_v9 = vpop.f32.mrf.mxu3 }
 0x53b   : > { %v1168_v10 = vadd.f32 %v1167_v8, %v1162_v5 }
 0x53d   : > { %v1169_v11 = vmul.f32 0.7978846, %v1168_v10 }
 0x53f   : > { %1932 = vtanh.f32 %v1169_v11 }
 0x545   : > { %v1933_v12 = vpop.eup %1932 }
 0x546   : > { %v1171_v13 = vadd.f32 1.0, %v1933_v12 }
 0x548   : > { %v1172_v14 = vmul.f32 0.5, %v1171_v13 }
 0x54a   : > { %v1173_v15 = vmul.f32 %v1172_v14, %v1162_v5 }
 0x54c   : > { %v1174_v16 = vpack.c.bf16 %v1173_v15, %v1173_v15 }
 0x54e   : > { %1248 = vmatmul.bf16.vlgmr.msrb.gmra.mxu2 %v1174_v16 }
 0x5d1   : > { %v1249_v18 = vpop.f32.mrf.mxu2 }
 0x5d2   : > { %v1250_v19 = vadd.f32 %v1249_v18, %v1191_v17 }
 0x5d4   : > { %v1253_v20 = vadd.f32 %v1250_v19, %v1085_v57 }
 0x5d6   : > { %v1256_v21 = vsel %vm945_vm3, %v1253_v20, 0.0 }
 0x5d7   : > { %1257 = vadd.xlane.f32.xlu2 %v1256_v21 }
 0x5d9   : > { %v1251_v22 = vpop.f32.mrf.mxu2 }
 0x64a   : > { %v1258_v24 = vpop.xlane.xlu2 %1257 }
 0x64b   : > { %v1259_v25 = vmul.f32 0.03125, %v1258_v24 }
 0x64d   : > { %v1260_v26 = vsub.f32 %v1253_v20, %v1259_v25 }
 0x64f   : > { %v1261_v27 = vmul.f32 %v2497_v30, %v1260_v26 }
 0x651   : > { %v1262_v28 = vmul.f32 %v1261_v27, %v1261_v27 }
 0x653   : > { %v1263_v29 = vsel %vm945_vm3, %v1262_v28, 0.0 }
 0x654   : > { %1264 = vadd.xlane.f32.xlu2 %v1263_v29 }
 0x6c7   : > { %v1265_v37 = vpop.xlane.xlu2 %1264 }
 0x6c8   : > { %v1266_v30 = vmul.f32 0.03125, %v1265_v37 }
 0x6ca   : > { %v1267_v38 = vadd.f32 1e-12, %v1266_v30 }
 0x6cc   : > { %1934 = vrsqrt.f32 %v1267_v38  ;;  %vm1274_vm9 = vweird.f32 %v1267_v38 }
 0x6d2   : > { %v1935_v39 = vpop.eup %1934 }
 0x6d3   : > { %v1269_v40 = vmul.f32 %v1935_v39, %v1267_v38  ;;  %vm1275_vm8 = vweird.f32 %v1935_v39 }
 0x6d4   : > { %vm1276_vm10 = vmor %vm1274_vm9, %vm1275_vm8 }
 0x6d5   : > { %v1270_v41 = vmul.f32 %v1935_v39, %v1269_v40 }
 0x6d7   : > { %v1271_v42 = vmul.f32 0.5, %v1270_v41 }
 0x6d9   : > { %v1272_v43 = vsub.f32 1.5, %v1271_v42 }
 0x6db   : > { %v1273_v44 = vmul.f32 %v1935_v39, %v1272_v43 }
 0x6dd   : > { %v1277_v45 = vsel %vm1276_vm10, %v1935_v39, %v1273_v44 }
 0x6de   : > { %v1278_v47 = vmul.f32 %v1277_v45, %v1260_v26 }
 0x6e0   : > { %v1279_v49 = vmul.f32 %v1278_v47, %v1254_v46 }
 0x6e2   : > { %v1280_v50 = vadd.f32 %v1279_v49, %v1255_v48 }
 0x6e4   : > { %v1281_v51 = vpack.c.bf16 %v1280_v50, %v1280_v50 }
 0x6e6   : > { %1355 = vmatmul.bf16.vlgmr.msra.gmra.mxu3 %v1281_v51 }
 0x769   : > { %v1356_v53 = vpop.f32.mrf.mxu3 }
 0x76a   : > { %v1357_v54 = vadd.f32 %v1356_v53, %v1298_v52 }
 0x76c   : > { %v1361_v56 = vsel %vm1360_vm11, %v1357_v54, -1e+30 }
 0x76d   : > { %v1362_v57 = vsel %vm945_vm3, %v1361_v56, -inf }
 0x76e   : > { %1363 = vmax.xlane.f32.xlu0 %v1362_v57 }
 0x771   : > { %v1358_v58 = vpop.f32.mrf.mxu3 }
 0x7e1   : > { %v1364_v59 = vpop.xlane.xlu0 %1363 }
 0x7e2   : > { %v1365_v60 = vsub.f32 %v1361_v56, %v1364_v59 }
 0x7e4   : > { %v1366_v61 = vmul.f32 1.442695, %v1365_v60 }
 0x7e6   : > { %1936 = vpow2.f32 %v1366_v61 }
 0x7ec   : > { %v1937_v62 = vpop.eup %1936 }
 0x7ed   : > { %v1368_v63 = vsel %vm945_vm3, %v1937_v62, 0.0 }
 0x7ee   : > { %1369 = vadd.xlane.f32.xlu1 %v1368_v63 }
 0x861   : > { %v1370_v0 = vpop.xlane.xlu1 %1369 }
 0x862   : > { %1938 = vrcp.f32 %v1370_v0  ;;  %v1382_v4 = vand.u32 2147483648, %v1370_v0  ;;  %v1380_v6 = vand.u32 2147483647, %v1370_v0  ;;  %vm1376_vm13 = vweird.f32 %v1370_v0 }
 0x864   : > { %v1383_v8 = vor.u32 1.1754944e-38, %v1382_v4  ;;  %vm1381_vm15 = vcmp.eq.f32.partialorder %v1380_v6, 8.507059e+37 }
 0x868   : > { %v1939_v1 = vpop.eup %1938 }
 0x869   : > { %v1372_v55 = vmul.f32 %v1939_v1, %v1370_v0  ;;  %vm1377_vm12 = vweird.f32 %v1939_v1 }
 0x86a   : > { %vm1378_vm14 = vmor %vm1376_vm13, %vm1377_vm12 }
 0x86b   : > { %v1373_v2 = vsub.f32 1.0, %v1372_v55 }
 0x86d   : > { %v1374_v5 = vmul.f32 %v1939_v1, %v1373_v2 }
 0x86f   : > { %v1375_v7 = vadd.f32 %v1939_v1, %v1374_v5 }
 0x871   : > { %v1379_v9 = vsel %vm1378_vm14, %v1939_v1, %v1375_v7 }
 0x872   : > { %v1384_v10 = vsel %vm1381_vm15, %v1383_v8, %v1379_v9 }
 0x873   : > { %v1385_v11 = vmul.f32 %v1937_v62, %v1384_v10 }
 0x875   : > { %1386 = vst [vmem:[%s564_s25] sm:$0x1] %v1385_v11 }
 0x876   : > { %2087 = shalt.err (!%p2084_p8)
}
 0x877   : > { %1859 = dma.vmem_to_hbm [thread:$0]  (%p2261_p5), %s1399_s26, 16, %s1401_s24, %s1388_s29  }
 0x878 PF: > { %s2606_s18 = sld [smem:[#allocation18_spill]] }
 0x879   : > { %s2607_s27 = sld [smem:[#allocation15_spill]] }
 0x87e   : > { %p1886_p9 = scmp.ge.s32.totalorder %s2606_s18, 2 }
 0x87f   : > { %s1412_s17 = sand.u32 1, %s2607_s27  }
 0x880   : > { %p1875_p10 = pnand %p1886_p9, %p2265_p6  ;;  %s1413_s23 = scalar_lea.sflag [#allocation4], %s1412_s17 }
 0x882   : > { %p1876_p11 = pneg %p1875_p10 }
 0x884   : > { %2117 = dma.done.wait (%p1876_p11), %s1413_s23, 16  }
 0x885   : > { %2119 = vsyncadd (%p1876_p11), %s1413_s23, 4294967280  ;;  %s2609_s21 = sld [smem:[#allocation19_spill]] }
 0x886   : > { %s2610_s18 = sld [smem:[#allocation16_spill]] }
 0x887   : > { %s2611_s19 = sld [smem:[#allocation17_spill]] }
 0x888   : > { %s2612_s20 = sld [smem:[#allocation20_spill]] }
 0x88b   : > { %p28_p12 = scmp.ge.s32.totalorder %s2609_s21, 4  }
 0x88d   :  { %30 = sbr.rel (!%p28_p12) target bundleno = 10 (0xa), region = 135 }
 0x892   :  { %1418 = vsyncpa [#allocation3], 1 }
 0x893   :  { %1420 = vsyncpa [#allocation3 + $0x1], 1 }
 0x894   :  { %1421 = vsyncpa [#allocation6], 1 }
 0x895   :  { %1422 = vsyncpa [#allocation9], 1 }
 0x896   :  { %1423 = vsyncpa [#allocation4], 1 }
 0x897   :  { %1425 = vsyncpa [#allocation4 + $0x1], 1 }

// kernel: _forward.1
= control target key start
LH: loop header
LB: loop body
LE: loop exit
PB: predicated region body
PF: predicated region fallthrough
CT: control target
= control target key end

     0   :  { %s2560_s0 = inlined_call_operand.vmem [shape: bf16[2,128,128], index: 0, kind: input, shape index: {}]   ;;  %s2561_s1 = inlined_call_operand.vmem [shape: f32[2,1,128], index: 1, kind: input, shape index: {}]   ;;  %s2562_s2 = inlined_call_operand.vmem [shape: bf16[128,128], index: 2, kind: input, shape index: {}]   ;;  %s2563_s3 = inlined_call_operand.vmem [shape: bf16[128,256], index: 3, kind: input, shape index: {}]   ;;  %s2564_s4 = inlined_call_operand.hbm [shape: bf16[128,128], index: 4, kind: input, shape index: {}]   ;;  %s2565_s5 = inlined_call_operand.hbm [shape: bf16[128,128], index: 5, kind: input, shape index: {}]   ;;  %s2566_s6 = inlined_call_operand.vmem [shape: f32[1,128], index: 6, kind: input, shape index: {}]   ;;  %s2567_s7 = inlined_call_operand.hbm [shape: bf16[128,128], index: 7, kind: input, shape index: {}]   ;;  %s2568_s8 = inlined_call_operand.vmem [shape: f32[1,128], index: 8, kind: input, shape index: {}]   ;;  %s2569_s9 = inlined_call_operand.vmem [shape: f32[1,128], index: 9, kind: input, shape index: {}]   ;;  %s2570_s10 = inlined_call_operand.vmem [shape: f32[1,128], index: 10, kind: input, shape index: {}]   ;;  %s2571_s11 = inlined_call_operand.vmem [shape: f32[1,128], index: 11, kind: input, shape index: {}]   ;;  %s2572_s12 = inlined_call_operand.vmem [shape: f32[1,128], index: 12, kind: input, shape index: {}]   ;;  %s2573_s13 = inlined_call_operand.hbm [shape: bf16[128,128], index: 13, kind: input, shape index: {}]   ;;  %s2574_s14 = inlined_call_operand.vmem [shape: f32[1,128], index: 14, kind: input, shape index: {}]   ;;  %s2575_s15 = inlined_call_operand.hbm [shape: f32[2,1,128], index: 15, kind: output, shape index: {}]  }
   0x1   :  { %2586 = sst [smem:[#allocation23_spill]] %s2564_s4 }
   0x2   :  { %2587 = sst [smem:[#allocation24_spill]] %s2565_s5 }
   0x3   :  { %2588 = sst [smem:[#allocation25_spill]] %s2575_s15 }
   0x4   :  { %20 = vsyncpa [#allocation3], 0 }
   0x5   :  { %21 = vsyncpa [#allocation6], 0 }
   0x6   :  { %22 = vsyncpa [#allocation9], 0 }
   0x7   :  { %23 = vsyncpa [#allocation4], 0 }
   0x8   :  { %25 = vsyncpa [#allocation4 + $0x1], 0  ;;  %s2223_s18 = smov 0   ;;  %s2225_s19 = smov 0  }
   0x9   :  { %s2227_s20 = smov 0   ;;  %s2229_s21 = smov 0  }
   0xa LB: > { %2589 = sst [smem:[#allocation15_spill]] %s2122_s18  ;;  %s2244_s22 = sadd.s32 4294967295, %s2134_s21   ;;  %s2134_s21 = sphi %s2229_s21, %s2609_s21   ;;  %s2130_s20 = sphi %s2227_s20, %s2612_s20   ;;  %s2126_s19 = sphi %s2225_s19, %s2611_s19   ;;  %s2122_s18 = sphi %s2223_s18, %s2610_s18  }
   0xb   : > { %2590 = sst [smem:[#allocation16_spill]] %s2126_s19  ;;  %s1505_s23 = sadd.s32 4294967294, %s2134_s21  }
   0xc   : > { %2591 = sst [smem:[#allocation17_spill]] %s2130_s20  ;;  %s2248_s24 = sadd.s32 1, %s2134_s21  }
   0xd   : > { %2592 = sst [smem:[#allocation18_spill]] %s2134_s21  ;;  %s363_s25 = sadd.s32 1, %s2130_s20 }
   0xe   : > { %2593 = sst [smem:[#allocation19_spill]] %s2248_s24  ;;  %s360_s26 = ssub.s32 %s2134_s21, %s2248_s24 }
   0xf   : > { %p373_p0 = scmp.ne.s32.totalorder %s2130_s20, %s2126_s19  ;;  %p361_p1 = scmp.eq.s32.totalorder %s360_s26, 0 }
  0x10   : > { %p374_p2 = scmp.eq.s32.totalorder %s2244_s22, 1  ;;  %p379_p3 = scmp.ne.s32.totalorder %s2126_s19, %s2122_s18 }
  0x11   : > { %p380_p4 = scmp.eq.s32.totalorder %s1505_s23, 1  ;;  %p1506_p7 = scmp.ge.s32.totalorder %s2134_s21, 1 }
  0x12   : > { %s2259_s27 = scalar_select %p361_p1, %s2130_s20, %s363_s25  }
  0x13   : > { %p2261_p5 = por %p374_p2, %p373_p0  ;;  %p2265_p6 = por %p380_p4, %p379_p3 }
  0x14   : > { %2594 = sst [smem:[#allocation20_spill]] %s2259_s27  ;;  %p387_p8 = scmp.lt.s32.totalorder %s2134_s21, 3 }
  0x15   : > { %s2595_s28 = scalar_select %p2261_p5, 1, 0 }
  0x16   : > { %s2597_s29 = scalar_select %p2265_p6, 1, 0 }
  0x17   : > { %2596 = sst [smem:[#allocation21_spill]] %s2595_s28  ;;  %p1878_p9 = scmp.eq.s32.totalorder %s2244_s22, 0 }
  0x18   : > { %2598 = sst [smem:[#allocation22_spill]] %s2597_s29  ;;  %p2272_p10 = pnand %p1506_p7, %p387_p8 }
  0x19   : > { %s2600_s5 = sld [smem:[#allocation24_spill]]  ;;  %s2136_s24 = smov [#allocation5]  }
  0x1a   : > { %p1861_p11 = pneg %p2272_p10  ;;  %s2601_s4 = sld [smem:[#allocation23_spill]] }
  0x1b   : > { %s420_s29 = sshll.u32 %s2136_s24, 4  ;;  %s2137_s16 = smov 64   ;;  %s421_s29 = int_to_ptr.vmem [resolvable:$true] %s420_s29 }
  0x1c   : > { %p2286_p12 = pnand %p1878_p9, %p1861_p11  ;;  %s2138_s17 = smov 4  }
  0x1d   : > { %s435_s18 = sshll.u32 %s2567_s7, 4  ;;  %s464_s28 = sshll.u32 %s2573_s13, 4  ;;  %s436_s18 = int_to_ptr.hbm [resolvable:$true] %s435_s18  ;;  %s465_s28 = int_to_ptr.hbm [resolvable:$true] %s464_s28 }
  0x1e   : > { %s2140_s15 = smov [#allocation7]  }
  0x1f   : > { %s418_s23 = sshll.u32 %s2600_s5, 4  ;;  %s2139_s5 = smov [#allocation2]   ;;  %s419_s23 = int_to_ptr.hbm [resolvable:$true] %s418_s23 }
  0x20   : > { %s404_s27 = sshll.u32 %s2601_s4, 4  ;;  %s406_s25 = sshll.u32 %s2139_s5, 4  ;;  %s405_s27 = int_to_ptr.hbm [resolvable:$true] %s404_s27  ;;  %s407_s25 = int_to_ptr.vmem [resolvable:$true] %s406_s25 }
  0x21   : > { %1867 = dma.hbm_to_vmem [thread:$0]  (!%p2286_p12), %s419_s23, 1024, %s421_s29, [#allocation6], %s2137_s16, %s2137_s16, %s2138_s17  }
  0x22   : > { %1864 = dma.hbm_to_vmem [thread:$0]  (!%p2286_p12), %s405_s27, 1024, %s407_s25, [#allocation3], %s2137_s16, %s2137_s16, %s2138_s17  }
  0x23   : > { %s437_s19 = sshll.u32 %s2140_s15, 4  ;;  %s2141_s29 = smov [#allocation8]   ;;  %s438_s19 = int_to_ptr.vmem [resolvable:$true] %s437_s19 }
  0x24   : > { %1870 = dma.hbm_to_vmem [thread:$0]  (!%p2286_p12), %s436_s18, 1024, %s438_s19, [#allocation6], %s2137_s16, %s2137_s16, %s2138_s17  }
  0x25   : > { %s466_s5 = sshll.u32 %s2141_s29, 4  ;;  %499 = sbr.rel (%p2272_p10) target bundleno = 2168 (0x878), region = 80  ;;  %s467_s5 = int_to_ptr.vmem [resolvable:$true] %s466_s5 }
  0x26   : > { %1873 = dma.hbm_to_vmem [thread:$0]  (!%p2286_p12), %s465_s28, 1024, %s467_s5, [#allocation9], %s2137_s16, %s2137_s16, %s2138_s17  }
  0x2a   : > { %2105 = dma.done.wait (%p1878_p9), [#allocation3], 1024  }
  0x2b   : > { %2107 = vsyncadd (%p1878_p9), [#allocation3], 4294966272 }
  0x2c   : > { %2109 = dma.done.wait (%p1878_p9), [#allocation6], 2048  }
  0x2d   : > { %2111 = vsyncadd (%p1878_p9), [#allocation6], 4294965248 }
  0x2e   : > { %2113 = dma.done.wait (%p1878_p9), [#allocation9], 1024  }
  0x2f   : > { %2115 = vsyncadd (%p1878_p9), [#allocation9], 4294966272  ;;  %v1610_v0 = vld [vmem:[%s2563_s3 + $0x70] sm:$0xf]  ;;  %v1802_v1 = vld [vmem:[%s2563_s3 + $0x74] sm:$0xf0] }
  0x30   : > { %v1602_v2 = vld [vmem:[%s2563_s3 + $0x60] sm:$0xf]  ;;  %v1611_v3 = vor.u32 %v1802_v1, %v1610_v0  ;;  %v1800_v4 = vld [vmem:[%s2563_s3 + $0x64] sm:$0xf0]  ;;  %v1594_v6 = vld [vmem:[%s2563_s3 + $0x50] sm:$0xf] }
  0x31   : > { %v1603_v5 = vor.u32 %v1800_v4, %v1602_v2  ;;  %v1798_v7 = vld [vmem:[%s2563_s3 + $0x54] sm:$0xf0]  ;;  %v1586_v9 = vld [vmem:[%s2563_s3 + $0x40] sm:$0xf]  ;;  %v1796_v10 = vld [vmem:[%s2563_s3 + $0x44] sm:$0xf0] }
  0x32   : > { %738 = vmatpush.bf16.msra.mxu0 %v1611_v3  ;;  %v1595_v8 = vor.u32 %v1798_v7, %v1594_v6  ;;  %v1587_v11 = vor.u32 %v1796_v10, %v1586_v9  ;;  %v1578_v12 = vld [vmem:[%s2563_s3 + $0x30] sm:$0xf]  ;;  %v1794_v13 = vld [vmem:[%s2563_s3 + $0x34] sm:$0xf0]  ;;  %v1570_v15 = vld [vmem:[%s2563_s3 + $0x20] sm:$0xf] }
  0x33   : > { %v1579_v14 = vor.u32 %v1794_v13, %v1578_v12  ;;  %v1792_v16 = vld [vmem:[%s2563_s3 + $0x24] sm:$0xf0]  ;;  %p565_p13 = scmp.lt.s32.totalorder %s2244_s22, 1  ;;  %v1562_v18 = vld [vmem:[%s2563_s3 + $0x10] sm:$0xf]  ;;  %v1810_v48 = vld [vmem:[%s2562_s2 + $0x38] sm:$0xff] }
  0x34   : > { %v1571_v17 = vor.u32 %v1792_v16, %v1570_v15  ;;  %v1790_v19 = vld [vmem:[%s2563_s3 + $0x14] sm:$0xf0]  ;;  %v1554_v21 = vld [vmem:[%s2563_s3] sm:$0xf]  ;;  %v1788_v22 = vld [vmem:[%s2563_s3 + $0x4] sm:$0xf0]  ;;  %900 = vmatpush.bf16.msra.mxu2 %v1810_v48 }
  0x35   : > { %s2362_s17 = scalar_select %p565_p13, %s2244_s22, 1  ;;  %v1563_v20 = vor.u32 %v1790_v19, %v1562_v18  ;;  %v1555_v23 = vor.u32 %v1788_v22, %v1554_v21  ;;  %v1801_v30 = vld [vmem:[%s2563_s3 + $0x74] sm:$0xf]  ;;  %v1612_v31 = vld [vmem:[%s2563_s3 + $0x78] sm:$0xf0]  ;;  %v1808_v58 = vld [vmem:[%s2562_s2 + $0x28] sm:$0xff] }
  0x36   : > { %739 = vmatpush.bf16.msra.mxu0 %v1603_v5  ;;  %v1799_v32 = vld [vmem:[%s2563_s3 + $0x64] sm:$0xf]  ;;  %v1615_v33 = vor.u32 %v1801_v30, %v1612_v31  ;;  %v1604_v34 = vld [vmem:[%s2563_s3 + $0x68] sm:$0xf0]  ;;  %v1797_v36 = vld [vmem:[%s2563_s3 + $0x54] sm:$0xf] }
  0x37   : > { %s1778_s5 = sshll.u32 %s2362_s17, 6  ;;  %v1607_v35 = vor.u32 %v1799_v32, %v1604_v34  ;;  %v1596_v37 = vld [vmem:[%s2563_s3 + $0x58] sm:$0xf0]  ;;  %v1795_v40 = vld [vmem:[%s2563_s3 + $0x44] sm:$0xf]  ;;  %v1809_v54 = vld [vmem:[%s2562_s2 + $0x30] sm:$0xff]  ;;  %s572_s28 = scalar_lea.vmem %s2561_s1, %s2362_s17 }
  0x38   : > { %s2374_s18 = scalar_lea.vmem %s2560_s0, %s1778_s5  ;;  %787 = vmatpush.bf16.msra.mxu1 %v1615_v33  ;;  %v1599_v39 = vor.u32 %v1797_v36, %v1596_v37  ;;  %v1588_v41 = vld [vmem:[%s2563_s3 + $0x48] sm:$0xf0]  ;;  %v1793_v43 = vld [vmem:[%s2563_s3 + $0x34] sm:$0xf]  ;;  %v1580_v44 = vld [vmem:[%s2563_s3 + $0x38] sm:$0xf0]  ;;  %901 = vmatpush.bf16.msra.mxu2 %v1809_v54 }
  0x39   : > { %v1779_v24 = vld [vmem:[%s2374_s18] sm:$0xff]  ;;  %v2378_v25 = vld [vmem:[%s2374_s18 + $0x8] sm:$0xff]  ;;  %v2382_v26 = vld [vmem:[%s2374_s18 + $0x10] sm:$0xff]  ;;  %v1591_v42 = vor.u32 %v1795_v40, %v1588_v41  ;;  %v1583_v45 = vor.u32 %v1793_v43, %v1580_v44  ;;  %vm945_vm3 = vcmask 1040384   ;;  %s2604_s30 = sld [smem:[#allocation25_spill]] }
  0x3a   : > { %740 = vmatpush.bf16.msra.mxu0 %v1595_v8  ;;  %v2386_v27 = vld [vmem:[%s2374_s18 + $0x18] sm:$0xff]  ;;  %v2390_v28 = vld [vmem:[%s2374_s18 + $0x20] sm:$0xff]  ;;  %v2394_v29 = vld [vmem:[%s2374_s18 + $0x28] sm:$0xff] }
  0x3b   : > { %v2416_v38 = vld [vmem:[%s2374_s18 + $0x30] sm:$0xff]  ;;  %v1791_v46 = vld [vmem:[%s2563_s3 + $0x24] sm:$0xf]  ;;  %v1572_v47 = vld [vmem:[%s2563_s3 + $0x28] sm:$0xf0] }
  0x3c   : > { %788 = vmatpush.bf16.msra.mxu1 %v1607_v35  ;;  %v1575_v49 = vor.u32 %v1791_v46, %v1572_v47  ;;  %v1789_v50 = vld [vmem:[%s2563_s3 + $0x14] sm:$0xf]  ;;  %v1564_v51 = vld [vmem:[%s2563_s3 + $0x18] sm:$0xf0]  ;;  %v1787_v55 = vld [vmem:[%s2563_s3 + $0x4] sm:$0xf]  ;;  %902 = vmatpush.bf16.msra.mxu2 %v1808_v58 }
  0x3d   : > { %v1786_v52 = vld [vmem:[%s2374_s18 + $0x38] sm:$0xff]  ;;  %v1567_v53 = vor.u32 %v1789_v50, %v1564_v51  ;;  %v1556_v56 = vld [vmem:[%s2563_s3 + $0x8] sm:$0xf0]  ;;  %v1807_v59 = vld [vmem:[%s2562_s2 + $0x20] sm:$0xff] }
  0x3e   : > { %741 = vmatpush.bf16.msra.mxu0 %v1587_v11  ;;  %v1559_v57 = vor.u32 %v1787_v55, %v1556_v56  ;;  %v1806_v60 = vld [vmem:[%s2562_s2 + $0x18] sm:$0xff]  ;;  %v1805_v61 = vld [vmem:[%s2562_s2 + $0x10] sm:$0xff]  ;;  %v1804_v63 = vld [vmem:[%s2562_s2 + $0x8] sm:$0xff] }
  0x3f   : > { %v1803_v0 = vld [vmem:[%s2562_s2] sm:$0xff]  ;;  %s1396_s23 = scalar_lea.hbm %s2604_s30, %s2244_s22  ;;  %s2080_s19 = scalar_lea.hbm %s2604_s30, 2 }
  0x40   : > { %789 = vmatpush.bf16.msra.mxu1 %v1599_v39  ;;  %903 = vmatpush.bf16.msra.mxu2 %v1807_v59  ;;  %v2476_v3 = vld [vmem:[%s2374_s18] sm:$0xf]  ;;  %s2603_s18 = sld [smem:[#allocation16_spill]]  ;;  %s1400_s24 = sshll.u32 %s1396_s23, 4  ;;  %s1401_s24 = int_to_ptr.hbm [resolvable:$true] %s1400_s24 }
  0x41   : > { %v922_v58 = vld [vmem:[%s572_s28] sm:$0x1]  ;;  %s2074_s5 = sshra.s32 %s1401_s24, 4  ;;  %s2075_s5 = int_to_ptr.hbm [resolvable:$true] %s2074_s5 }
  0x42   : > { %742 = vmatpush.bf16.msra.mxu0 %v1579_v14  ;;  %s2076_s4 = scalar_lea.hbm %s2075_s5, 1  ;;  %p2081_p3 = scmp.lt.s32.totalorder %s2075_s5, %s2604_s30 }
  0x43   : > { %p2077_p0 = scmp.ne.s32.totalorder %s2075_s5, %s2076_s4  ;;  %p2082_p4 = scmp.lt.s32.totalorder %s2080_s19, %s2076_s4 }
  0x44   : > { %790 = vmatpush.bf16.msra.mxu1 %v1591_v42  ;;  %904 = vmatpush.bf16.msra.mxu2 %v1806_v60 }
  0x45   : > { %p2078_p1 = pnand %p2077_p0, %p2261_p5  ;;  %p2083_p7 = por %p2082_p4, %p2081_p3 }
  0x46   : > { %743 = vmatpush.bf16.msra.mxu0 %v1571_v17  ;;  %s563_s27 = sand.u32 1, %s2603_s18  }
  0x47   : > { %s564_s25 = scalar_lea.vmem [#allocation10], %s563_s27  ;;  %s1388_s29 = scalar_lea.sflag [#allocation4], %s563_s27 }
  0x48   : > { %791 = vmatpush.bf16.msra.mxu1 %v1583_v45  ;;  %905 = vmatpush.bf16.msra.mxu2 %v1805_v61  ;;  %s1398_s26 = sshll.u32 %s564_s25, 4  ;;  %p2079_p2 = pneg %p2078_p1  ;;  %s1399_s26 = int_to_ptr.vmem [resolvable:$true] %s1398_s26 }
  0x4a   : > { %744 = vmatpush.bf16.msra.mxu0 %v1563_v20  ;;  %p2084_p8 = pnand %p2083_p7, %p2079_p2 }
  0x4c   : > { %792 = vmatpush.bf16.msra.mxu1 %v1575_v49  ;;  %906 = vmatpush.bf16.msra.mxu2 %v1804_v63 }
  0x4e   : > { %745 = vmatpush.bf16.msra.mxu0 %v1555_v23 }
  0x50   : > { %793 = vmatpush.bf16.msra.mxu1 %v1567_v53  ;;  %907 = vmatpush.bf16.msra.mxu2 %v1803_v0  ;;  %v1818_v0 = vld [vmem:[#allocation2 + $0x38] sm:$0xff] }
  0x51   : > { %746 = vmatmul.bf16.vlgmr.msra.gmra.mxu0 %v1779_v24 }
  0x53   : > { %908 = vmatmul.bf16.vlgmr.msra.gmra.mxu2 %v2476_v3 }
  0x54   : > { %794 = vmatpush.bf16.msra.mxu1 %v1559_v57 }
  0x57   : > { %795 = vmatmul.bf16.vlgmr.msra.gmra.mxu1 %v1779_v24 }
  0x61   : > { %751 = vmatmul.bf16.gmra.mxu0 %v2378_v25 }
  0x67   : > { %800 = vmatmul.bf16.gmra.mxu1 %v2378_v25 }
  0x71   : > { %756 = vmatmul.bf16.gmra.mxu0 %v2382_v26 }
  0x77   : > { %805 = vmatmul.bf16.gmra.mxu1 %v2382_v26 }
  0x81   : > { %761 = vmatmul.bf16.gmra.mxu0 %v2386_v27 }
  0x87   : > { %810 = vmatmul.bf16.gmra.mxu1 %v2386_v27 }
  0x91   : > { %766 = vmatmul.bf16.gmra.mxu0 %v2390_v28 }
  0x97   : > { %815 = vmatmul.bf16.gmra.mxu1 %v2390_v28 }
  0xa1   : > { %771 = vmatmul.bf16.gmra.mxu0 %v2394_v29 }
  0xa7   : > { %820 = vmatmul.bf16.gmra.mxu1 %v2394_v29 }
  0xb1   : > { %776 = vmatmul.bf16.gmra.mxu0 %v2416_v38 }
  0xb7   : > { %825 = vmatmul.bf16.gmra.mxu1 %v2416_v38 }
  0xc1   : > { %781 = vmatmul.bf16.gmra.mxu0 %v1786_v52 }
  0xc7   : > { %830 = vmatmul.bf16.gmra.mxu1 %v1786_v52  ;;  %v589_v52 = vlaneseq }
  0xc9   : > { %v937_v53 = vshrl.u32 %v589_v52, 7  ;;  %v2484_v55 = vand.u32 127, %v589_v52  ;;  %v1059_v52 = vld [vmem:[%s2569_s9] sm:$0x1] }
  0xcb   : > { %v940_v54 = vadd.s32 1, %v937_v53  ;;  %v938_v56 = vmul.u32 128, %v937_v53  ;;  %vm591_vm4 = vcmp.lt.s32.totalorder %v2484_v55, 32  ;;  %vm1360_vm11 = vcmp.lt.s32.totalorder %v2484_v55, 4 }
  0xcd   : > { %v941_v57 = vmul.u32 128, %v940_v54  ;;  %vm939_vm0 = vcmp.ge.s32.totalorder %v2484_v55, %v938_v56  ;;  %v1060_v54 = vld [vmem:[%s2570_s10] sm:$0x1] }
  0xce   : > { %v747_v62 = vpop.f32.mrf.mxu0 }
  0xcf   : > { %vm942_vm1 = vcmp.lt.s32.totalorder %v2484_v55, %v941_v57 }
  0xd0   : > { %vm943_vm2 = vmand %vm939_vm0, %vm942_vm1 }
  0xd4   : > { %v796_v21 = vpop.f32.mrf.mxu1 }
  0xd6   : > { %v749_v1 = vpop.f32.mrf.mxu0  ;;  %v909_v31 = vpop.f32.mrf.mxu2 }
  0xd7   : > { %v914_v2 = vpack.c.bf16 %v749_v1, %v747_v62  ;;  %v913_v40 = vpack.c.bf16 %v909_v31, %v909_v31  ;;  %v1817_v1 = vld [vmem:[#allocation2 + $0x30] sm:$0xff] }
  0xdc   : > { %v798_v24 = vpop.f32.mrf.mxu1 }
  0xdd   : > { %v956_v25 = vpack.c.bf16 %v798_v24, %v796_v21  ;;  %v1057_v21 = vunpack.c.l.bf16 %v2476_v3 }
  0xde   : > { %v752_v4 = vpop.f32.mrf.mxu0  ;;  %v911_v33 = vpop.f32.mrf.mxu2 }
  0xe4   : > { %v801_v27 = vpop.f32.mrf.mxu1 }
  0xe6   : > { %v754_v5 = vpop.f32.mrf.mxu0 }
  0xe7   : > { %v915_v6 = vpack.c.bf16 %v754_v5, %v752_v4 }
  0xec   : > { %v803_v29 = vpop.f32.mrf.mxu1 }
  0xed   : > { %v957_v30 = vpack.c.bf16 %v803_v29, %v801_v27  ;;  %v2142_v29 = vmov 0.0  }
  0xee   : > { %v757_v7 = vpop.f32.mrf.mxu0 }
  0xf4   : > { %v806_v32 = vpop.f32.mrf.mxu1 }
  0xf6   : > { %v759_v8 = vpop.f32.mrf.mxu0 }
  0xf7   : > { %v916_v9 = vpack.c.bf16 %v759_v8, %v757_v7 }
  0xfc   : > { %v808_v34 = vpop.f32.mrf.mxu1 }
  0xfd   : > { %v958_v35 = vpack.c.bf16 %v808_v34, %v806_v32  ;;  %v1825_v34 = vld [vmem:[#allocation5 + $0x30] sm:$0xff] }
  0xfe   : > { %v762_v10 = vpop.f32.mrf.mxu0 }
 0x104   : > { %v811_v36 = vpop.f32.mrf.mxu1 }
 0x106   : > { %v764_v11 = vpop.f32.mrf.mxu0 }
 0x107   : > { %v917_v12 = vpack.c.bf16 %v764_v11, %v762_v10  ;;  %v1815_v10 = vld [vmem:[#allocation2 + $0x20] sm:$0xff]  ;;  %v1814_v11 = vld [vmem:[#allocation2 + $0x18] sm:$0xff] }
 0x10c   : > { %v813_v37 = vpop.f32.mrf.mxu1 }
 0x10d   : > { %v959_v38 = vpack.c.bf16 %v813_v37, %v811_v36  ;;  %v1823_v36 = vld [vmem:[#allocation5 + $0x20] sm:$0xff]  ;;  %v1822_v37 = vld [vmem:[#allocation5 + $0x18] sm:$0xff] }
 0x10e   : > { %v767_v13 = vpop.f32.mrf.mxu0 }
 0x114   : > { %v816_v39 = vpop.f32.mrf.mxu1 }
 0x116   : > { %v769_v14 = vpop.f32.mrf.mxu0 }
 0x117   : > { %v918_v15 = vpack.c.bf16 %v769_v14, %v767_v13  ;;  %v1812_v13 = vld [vmem:[#allocation2 + $0x8] sm:$0xff]  ;;  %v1811_v14 = vld [vmem:[#allocation2] sm:$0xff] }
 0x11c   : > { %v818_v41 = vpop.f32.mrf.mxu1 }
 0x11d   : > { %v960_v51 = vpack.c.bf16 %v818_v41, %v816_v39  ;;  %v1820_v39 = vld [vmem:[#allocation5 + $0x8] sm:$0xff]  ;;  %v1834_v41 = vld [vmem:[#allocation7 + $0x38] sm:$0xff] }
 0x11e   : > { %v772_v16 = vpop.f32.mrf.mxu0 }
 0x124   : > { %v821_v42 = vpop.f32.mrf.mxu1 }
 0x126   : > { %v774_v17 = vpop.f32.mrf.mxu0 }
 0x127   : > { %v919_v28 = vpack.c.bf16 %v774_v17, %v772_v16 }
 0x12c   : > { %v823_v43 = vpop.f32.mrf.mxu1 }
 0x12d   : > { %v961_v50 = vpack.c.bf16 %v823_v43, %v821_v42 }
 0x12e   : > { %v777_v18 = vpop.f32.mrf.mxu0 }
 0x134   : > { %v826_v44 = vpop.f32.mrf.mxu1 }
 0x136   : > { %v779_v19 = vpop.f32.mrf.mxu0 }
 0x137   : > { %v920_v26 = vpack.c.bf16 %v779_v19, %v777_v18 }
 0x13c   : > { %v828_v45 = vpop.f32.mrf.mxu1 }
 0x13d   : > { %v962_v49 = vpack.c.bf16 %v828_v45, %v826_v44 }
 0x13e   : > { %v782_v20 = vpop.f32.mrf.mxu0 }
 0x144   : > { %v831_v46 = vpop.f32.mrf.mxu1 }
 0x146   : > { %v784_v22 = vpop.f32.mrf.mxu0 }
 0x147   : > { %v921_v23 = vpack.c.bf16 %v784_v22, %v782_v20 }
 0x149   : > { %923 = vmatpush.bf16.xpose.msra.mxu3 %v921_v23 }
 0x14c   : > { %v833_v47 = vpop.f32.mrf.mxu1 }
 0x14d   : > { %v963_v48 = vpack.c.bf16 %v833_v47, %v831_v46 }
 0x14f   : > { %964 = vmatpush.bf16.msrb.mxu2 %v963_v48 }
 0x151   : > { %924 = vmatpush.bf16.xpose.msra.mxu3 %v920_v26  ;;  %v1826_v26 = vld [vmem:[#allocation5 + $0x38] sm:$0xff] }
 0x153   : > { %965 = vmatpush.bf16.msrb.mxu2 %v962_v49 }
 0x157   : > { %966 = vmatpush.bf16.msrb.mxu2 %v961_v50 }
 0x159   : > { %925 = vmatpush.bf16.xpose.msra.mxu3 %v919_v28 }
 0x15b   : > { %967 = vmatpush.bf16.msrb.mxu2 %v960_v51 }
 0x15f   : > { %968 = vmatpush.bf16.msrb.mxu2 %v959_v38  ;;  %v1821_v38 = vld [vmem:[#allocation5 + $0x10] sm:$0xff] }
 0x161   : > { %926 = vmatpush.bf16.xpose.msra.mxu3 %v918_v15 }
 0x163   : > { %969 = vmatpush.bf16.msrb.mxu2 %v958_v35  ;;  %v1824_v35 = vld [vmem:[#allocation5 + $0x28] sm:$0xff] }
 0x167   : > { %970 = vmatpush.bf16.msrb.mxu2 %v957_v30  ;;  %v2497_v30 = vsel %vm591_vm4, 1.0, %v2142_v29 }
 0x169   : > { %927 = vmatpush.bf16.xpose.msra.mxu3 %v917_v12  ;;  %v1813_v12 = vld [vmem:[#allocation2 + $0x10] sm:$0xff] }
 0x16b   : > { %971 = vmatpush.bf16.msrb.mxu2 %v956_v25 }
 0x16f   : > { %1044 = vmatpush.bf16.msra.mxu2 %v1818_v0  ;;  %v1828_v0 = vld [vmem:[#allocation7 + $0x8] sm:$0xff] }
 0x171   : > { %928 = vmatpush.bf16.xpose.msra.mxu3 %v916_v9 }
 0x173   : > { %1045 = vmatpush.bf16.msra.mxu2 %v1817_v1  ;;  %v1827_v1 = vld [vmem:[#allocation7] sm:$0xff] }
 0x179   : > { %929 = vmatpush.bf16.xpose.msra.mxu3 %v915_v6 }
 0x181   : > { %930 = vmatpush.bf16.xpose.msra.mxu3 %v914_v2  ;;  %v1816_v2 = vld [vmem:[#allocation2 + $0x28] sm:$0xff] }
 0x182   : > { %1046 = vmatpush.bf16.msra.mxu2 %v1816_v2  ;;  %v1103_v2 = vld [vmem:[%s2566_s6] sm:$0x1] }
 0x186   : > { %1047 = vmatpush.bf16.msra.mxu2 %v1815_v10 }
 0x188   : > { %931 = vmatmul.bf16.vlgmr.msra.gmra.mxu3 %v913_v40  ;;  %v1819_v40 = vld [vmem:[#allocation5] sm:$0xff] }
 0x189   : > { %1152 = vmatpush.bf16.msrb.mxu3 %v1826_v26 }
 0x18a   : > { %1048 = vmatpush.bf16.msra.mxu2 %v1814_v11 }
 0x18d   : > { %1153 = vmatpush.bf16.msrb.mxu3 %v1825_v34  ;;  %v1837_v34 = vld [vmem:[#allocation8 + $0x10] sm:$0xff] }
 0x18e   : > { %1049 = vmatpush.bf16.msra.mxu2 %v1813_v12 }
 0x191   : > { %1154 = vmatpush.bf16.msrb.mxu3 %v1824_v35  ;;  %v1836_v35 = vld [vmem:[#allocation8 + $0x8] sm:$0xff] }
 0x192   : > { %1050 = vmatpush.bf16.msra.mxu2 %v1812_v13 }
 0x195   : > { %1155 = vmatpush.bf16.msrb.mxu3 %v1823_v36  ;;  %v1835_v36 = vld [vmem:[#allocation8] sm:$0xff] }
 0x196   : > { %1051 = vmatpush.bf16.msra.mxu2 %v1811_v14 }
 0x199   : > { %1156 = vmatpush.bf16.msrb.mxu3 %v1822_v37 }
 0x19d   : > { %1157 = vmatpush.bf16.msrb.mxu3 %v1821_v38 }
 0x1a1   : > { %1158 = vmatpush.bf16.msrb.mxu3 %v1820_v39 }
 0x1a5   : > { %1159 = vmatpush.bf16.msrb.mxu3 %v1819_v40 }
 0x20b   : > { %v932_v59 = vpop.f32.mrf.mxu3 }
 0x20c   : > { %v933_v60 = vadd.f32 %v932_v59, %v922_v58  ;;  %v1833_v59 = vld [vmem:[#allocation7 + $0x30] sm:$0xff] }
 0x20e   : > { %v944_v61 = vsel %vm943_vm2, %v933_v60, -1e+30  ;;  %v1832_v60 = vld [vmem:[#allocation7 + $0x28] sm:$0xff] }
 0x20f   : > { %v946_v62 = vsel %vm945_vm3, %v944_v61, -inf }
 0x210   : > { %947 = vmax.xlane.f32.xlu0 %v946_v62  ;;  %v1830_v62 = vld [vmem:[#allocation7 + $0x18] sm:$0xff] }
 0x213   : > { %v934_v63 = vpop.f32.mrf.mxu3 }
 0x214   : > { %v1829_v63 = vld [vmem:[#allocation7 + $0x10] sm:$0xff] }
 0x283   : > { %v948_v4 = vpop.xlane.xlu0 %947 }
 0x284   : > { %v949_v5 = vsub.f32 %v944_v61, %v948_v4  ;;  %v1831_v61 = vld [vmem:[#allocation7 + $0x20] sm:$0xff] }
 0x286   : > { %v950_v6 = vmul.f32 1.442695, %v949_v5 }
 0x288   : > { %1926 = vpow2.f32 %v950_v6 }
 0x28e   : > { %v1927_v7 = vpop.eup %1926 }
 0x28f   : > { %v952_v8 = vsel %vm945_vm3, %v1927_v7, 0.0  ;;  %v955_v9 = vpack.c.bf16 %v1927_v7, %v1927_v7 }
 0x290   : > { %953 = vadd.xlane.f32.xlu0 %v952_v8 }
 0x291   : > { %972 = vmatmul.bf16.vlgmr.msrb.gmra.mxu2 %v955_v9 }
 0x292   : > { %1240 = vmatpush.bf16.msrb.mxu2 %v1834_v41 }
 0x296   : > { %1241 = vmatpush.bf16.msrb.mxu2 %v1833_v59 }
 0x29a   : > { %1242 = vmatpush.bf16.msrb.mxu2 %v1832_v60 }
 0x29e   : > { %1243 = vmatpush.bf16.msrb.mxu2 %v1831_v61 }
 0x2a2   : > { %1244 = vmatpush.bf16.msrb.mxu2 %v1830_v62 }
 0x2a6   : > { %1245 = vmatpush.bf16.msrb.mxu2 %v1829_v63 }
 0x2aa   : > { %1246 = vmatpush.bf16.msrb.mxu2 %v1828_v0 }
 0x2ae   : > { %1247 = vmatpush.bf16.msrb.mxu2 %v1827_v1 }
 0x303   : > { %v954_v15 = vpop.xlane.xlu0 %953 }
 0x304   : > { %1928 = vrcp.f32 %v954_v15 }
 0x30a   : > { %v1929_v16 = vpop.eup %1928 }
 0x314   : > { %v973_v17 = vpop.f32.mrf.mxu2 }
 0x315   : > { %v978_v18 = vmul.f32 %v1929_v16, %v973_v17  ;;  %v1191_v17 = vld [vmem:[%s2568_s8] sm:$0x1] }
 0x317   : > { %v979_v19 = vpack.c.bf16 %v978_v18, %v978_v18 }
 0x319   : > { %1052 = vmatmul.bf16.vlgmr.msra.gmra.mxu2 %v979_v19 }
 0x31c   : > { %v975_v20 = vpop.f32.mrf.mxu2 }
 0x39c   : > { %v1053_v22 = vpop.f32.mrf.mxu2 }
 0x39d   : > { %v1058_v23 = vadd.f32 %v1057_v21, %v1053_v22 }
 0x39f   : > { %v1061_v24 = vsel %vm945_vm3, %v1058_v23, 0.0 }
 0x3a0   : > { %1062 = vadd.xlane.f32.xlu1 %v1061_v24 }
 0x3a4   : > { %v1055_v25 = vpop.f32.mrf.mxu2 }
 0x413   : > { %v1063_v27 = vpop.xlane.xlu1 %1062 }
 0x414   : > { %v1064_v28 = vmul.f32 0.03125, %v1063_v27 }
 0x416   : > { %v1065_v31 = vsub.f32 %v1058_v23, %v1064_v28  ;;  %v1842_v23 = vld [vmem:[#allocation8 + $0x38] sm:$0xff] }
 0x417   : > { %1347 = vmatpush.bf16.msra.mxu3 %v1842_v23 }
 0x418   : > { %v1066_v32 = vmul.f32 %v2497_v30, %v1065_v31 }
 0x41a   : > { %v1067_v33 = vmul.f32 %v1066_v32, %v1066_v32  ;;  %v1840_v32 = vld [vmem:[#allocation8 + $0x28] sm:$0xff] }
 0x41c   : > { %v1068_v3 = vsel %vm945_vm3, %v1067_v33, 0.0  ;;  %v1839_v33 = vld [vmem:[#allocation8 + $0x20] sm:$0xff] }
 0x41d   : > { %1069 = vadd.xlane.f32.xlu1 %v1068_v3  ;;  %v1838_v3 = vld [vmem:[#allocation8 + $0x18] sm:$0xff] }
 0x490   : > { %v1070_v42 = vpop.xlane.xlu1 %1069 }
 0x491   : > { %v1071_v43 = vmul.f32 0.03125, %v1070_v42 }
 0x493   : > { %v1072_v44 = vadd.f32 1e-12, %v1071_v43 }
 0x495   : > { %1930 = vrsqrt.f32 %v1072_v44  ;;  %vm1079_vm6 = vweird.f32 %v1072_v44 }
 0x49b   : > { %v1931_v45 = vpop.eup %1930 }
 0x49c   : > { %v1074_v46 = vmul.f32 %v1931_v45, %v1072_v44  ;;  %vm1080_vm5 = vweird.f32 %v1931_v45 }
 0x49d   : > { %vm1081_vm7 = vmor %vm1079_vm6, %vm1080_vm5 }
 0x49e   : > { %v1075_v47 = vmul.f32 %v1931_v45, %v1074_v46  ;;  %v1254_v46 = vld [vmem:[%s2571_s11] sm:$0x1] }
 0x4a0   : > { %v1076_v48 = vmul.f32 0.5, %v1075_v47 }
 0x4a2   : > { %v1077_v49 = vsub.f32 1.5, %v1076_v48  ;;  %v1255_v48 = vld [vmem:[%s2572_s12] sm:$0x1] }
 0x4a4   : > { %v1078_v50 = vmul.f32 %v1931_v45, %v1077_v49 }
 0x4a6   : > { %v1082_v51 = vsel %vm1081_vm7, %v1931_v45, %v1078_v50 }
 0x4a7   : > { %v1083_v53 = vmul.f32 %v1082_v51, %v1065_v31  ;;  %v1841_v31 = vld [vmem:[#allocation8 + $0x30] sm:$0xff] }
 0x4a8   : > { %1348 = vmatpush.bf16.msra.mxu3 %v1841_v31 }
 0x4a9   : > { %v1084_v56 = vmul.f32 %v1083_v53, %v1059_v52  ;;  %v1298_v52 = vld [vmem:[%s2574_s14] sm:$0x1] }
 0x4ab   : > { %v1085_v57 = vadd.f32 %v1084_v56, %v1060_v54 }
 0x4ac   : > { %1349 = vmatpush.bf16.msra.mxu3 %v1840_v32 }
 0x4ad   : > { %v1086_v58 = vpack.c.bf16 %v1085_v57, %v1085_v57 }
 0x4af   : > { %1160 = vmatmul.bf16.vlgmr.msrb.gmra.mxu3 %v1086_v58 }
 0x4b0   : > { %1350 = vmatpush.bf16.msra.mxu3 %v1839_v33 }
 0x4b4   : > { %1351 = vmatpush.bf16.msra.mxu3 %v1838_v3 }
 0x4b8   : > { %1352 = vmatpush.bf16.msra.mxu3 %v1837_v34 }
 0x4bc   : > { %1353 = vmatpush.bf16.msra.mxu3 %v1836_v35 }
 0x4c0   : > { %1354 = vmatpush.bf16.msra.mxu3 %v1835_v36 }
 0x532   : > { %v1161_v4 = vpop.f32.mrf.mxu3 }
 0x533   : > { %v1162_v5 = vadd.f32 %v1161_v4, %v1103_v2 }
 0x535   : > { %v1165_v6 = vmul.f32 %v1162_v5, %v1162_v5 }
 0x537   : > { %v1166_v7 = vmul.f32 %v1165_v6, %v1162_v5 }
 0x539   : > { %v1167_v8 = vmul.f32 0.044715, %v1166_v7 }
 0x53a   : > { %v1163_v9 = vpop.f32.mrf.mxu3 }
 0x53b   : > { %v1168_v10 = vadd.f32 %v1167_v8, %v1162_v5 }
 0x53d   : > { %v1169_v11 = vmul.f32 0.7978846, %v1168_v10 }
 0x53f   : > { %1932 = vtanh.f32 %v1169_v11 }
 0x545   : > { %v1933_v12 = vpop.eup %1932 }
 0x546   : > { %v1171_v13 = vadd.f32 1.0, %v1933_v12 }
 0x548   : > { %v1172_v14 = vmul.f32 0.5, %v1171_v13 }
 0x54a   : > { %v1173_v15 = vmul.f32 %v1172_v14, %v1162_v5 }
 0x54c   : > { %v1174_v16 = vpack.c.bf16 %v1173_v15, %v1173_v15 }
 0x54e   : > { %1248 = vmatmul.bf16.vlgmr.msrb.gmra.mxu2 %v1174_v16 }
 0x5d1   : > { %v1249_v18 = vpop.f32.mrf.mxu2 }
 0x5d2   : > { %v1250_v19 = vadd.f32 %v1249_v18, %v1191_v17 }
 0x5d4   : > { %v1253_v20 = vadd.f32 %v1250_v19, %v1085_v57 }
 0x5d6   : > { %v1256_v21 = vsel %vm945_vm3, %v1253_v20, 0.0 }
 0x5d7   : > { %1257 = vadd.xlane.f32.xlu2 %v1256_v21 }
 0x5d9   : > { %v1251_v22 = vpop.f32.mrf.mxu2 }
 0x64a   : > { %v1258_v24 = vpop.xlane.xlu2 %1257 }
 0x64b   : > { %v1259_v25 = vmul.f32 0.03125, %v1258_v24 }
 0x64d   : > { %v1260_v26 = vsub.f32 %v1253_v20, %v1259_v25 }
 0x64f   : > { %v1261_v27 = vmul.f32 %v2497_v30, %v1260_v26 }
 0x651   : > { %v1262_v28 = vmul.f32 %v1261_v27, %v1261_v27 }
 0x653   : > { %v1263_v29 = vsel %vm945_vm3, %v1262_v28, 0.0 }
 0x654   : > { %1264 = vadd.xlane.f32.xlu2 %v1263_v29 }
 0x6c7   : > { %v1265_v37 = vpop.xlane.xlu2 %1264 }
 0x6c8   : > { %v1266_v30 = vmul.f32 0.03125, %v1265_v37 }
 0x6ca   : > { %v1267_v38 = vadd.f32 1e-12, %v1266_v30 }
 0x6cc   : > { %1934 = vrsqrt.f32 %v1267_v38  ;;  %vm1274_vm9 = vweird.f32 %v1267_v38 }
 0x6d2   : > { %v1935_v39 = vpop.eup %1934 }
 0x6d3   : > { %v1269_v40 = vmul.f32 %v1935_v39, %v1267_v38  ;;  %vm1275_vm8 = vweird.f32 %v1935_v39 }
 0x6d4   : > { %vm1276_vm10 = vmor %vm1274_vm9, %vm1275_vm8 }
 0x6d5   : > { %v1270_v41 = vmul.f32 %v1935_v39, %v1269_v40 }
 0x6d7   : > { %v1271_v42 = vmul.f32 0.5, %v1270_v41 }
 0x6d9   : > { %v1272_v43 = vsub.f32 1.5, %v1271_v42 }
 0x6db   : > { %v1273_v44 = vmul.f32 %v1935_v39, %v1272_v43 }
 0x6dd   : > { %v1277_v45 = vsel %vm1276_vm10, %v1935_v39, %v1273_v44 }
 0x6de   : > { %v1278_v47 = vmul.f32 %v1277_v45, %v1260_v26 }
 0x6e0   : > { %v1279_v49 = vmul.f32 %v1278_v47, %v1254_v46 }
 0x6e2   : > { %v1280_v50 = vadd.f32 %v1279_v49, %v1255_v48 }
 0x6e4   : > { %v1281_v51 = vpack.c.bf16 %v1280_v50, %v1280_v50 }
 0x6e6   : > { %1355 = vmatmul.bf16.vlgmr.msra.gmra.mxu3 %v1281_v51 }
 0x769   : > { %v1356_v53 = vpop.f32.mrf.mxu3 }
 0x76a   : > { %v1357_v54 = vadd.f32 %v1356_v53, %v1298_v52 }
 0x76c   : > { %v1361_v56 = vsel %vm1360_vm11, %v1357_v54, -1e+30 }
 0x76d   : > { %v1362_v57 = vsel %vm945_vm3, %v1361_v56, -inf }
 0x76e   : > { %1363 = vmax.xlane.f32.xlu0 %v1362_v57 }
 0x771   : > { %v1358_v58 = vpop.f32.mrf.mxu3 }
 0x7e1   : > { %v1364_v59 = vpop.xlane.xlu0 %1363 }
 0x7e2   : > { %v1365_v60 = vsub.f32 %v1361_v56, %v1364_v59 }
 0x7e4   : > { %v1366_v61 = vmul.f32 1.442695, %v1365_v60 }
 0x7e6   : > { %1936 = vpow2.f32 %v1366_v61 }
 0x7ec   : > { %v1937_v62 = vpop.eup %1936 }
 0x7ed   : > { %v1368_v63 = vsel %vm945_vm3, %v1937_v62, 0.0 }
 0x7ee   : > { %1369 = vadd.xlane.f32.xlu1 %v1368_v63 }
 0x861   : > { %v1370_v0 = vpop.xlane.xlu1 %1369 }
 0x862   : > { %1938 = vrcp.f32 %v1370_v0  ;;  %v1382_v4 = vand.u32 2147483648, %v1370_v0  ;;  %v1380_v6 = vand.u32 2147483647, %v1370_v0  ;;  %vm1376_vm13 = vweird.f32 %v1370_v0 }
 0x864   : > { %v1383_v8 = vor.u32 1.1754944e-38, %v1382_v4  ;;  %vm1381_vm15 = vcmp.eq.f32.partialorder %v1380_v6, 8.507059e+37 }
 0x868   : > { %v1939_v1 = vpop.eup %1938 }
 0x869   : > { %v1372_v55 = vmul.f32 %v1939_v1, %v1370_v0  ;;  %vm1377_vm12 = vweird.f32 %v1939_v1 }
 0x86a   : > { %vm1378_vm14 = vmor %vm1376_vm13, %vm1377_vm12 }
 0x86b   : > { %v1373_v2 = vsub.f32 1.0, %v1372_v55 }
 0x86d   : > { %v1374_v5 = vmul.f32 %v1939_v1, %v1373_v2 }
 0x86f   : > { %v1375_v7 = vadd.f32 %v1939_v1, %v1374_v5 }
 0x871   : > { %v1379_v9 = vsel %vm1378_vm14, %v1939_v1, %v1375_v7 }
 0x872   : > { %v1384_v10 = vsel %vm1381_vm15, %v1383_v8, %v1379_v9 }
 0x873   : > { %v1385_v11 = vmul.f32 %v1937_v62, %v1384_v10 }
 0x875   : > { %1386 = vst [vmem:[%s564_s25] sm:$0x1] %v1385_v11 }
 0x876   : > { %2087 = shalt.err (!%p2084_p8)
}
 0x877   : > { %1859 = dma.vmem_to_hbm [thread:$0]  (%p2261_p5), %s1399_s26, 16, %s1401_s24, %s1388_s29  }
 0x878 PF: > { %s2606_s18 = sld [smem:[#allocation18_spill]] }
 0x879   : > { %s2607_s27 = sld [smem:[#allocation15_spill]] }
 0x87e   : > { %p1886_p9 = scmp.ge.s32.totalorder %s2606_s18, 2 }
 0x87f   : > { %s1412_s17 = sand.u32 1, %s2607_s27  }
 0x880   : > { %p1875_p10 = pnand %p1886_p9, %p2265_p6  ;;  %s1413_s23 = scalar_lea.sflag [#allocation4], %s1412_s17 }
 0x882   : > { %p1876_p11 = pneg %p1875_p10 }
 0x884   : > { %2117 = dma.done.wait (%p1876_p11), %s1413_s23, 16  }
 0x885   : > { %2119 = vsyncadd (%p1876_p11), %s1413_s23, 4294967280  ;;  %s2609_s21 = sld [smem:[#allocation19_spill]] }
 0x886   : > { %s2610_s18 = sld [smem:[#allocation16_spill]] }
 0x887   : > { %s2611_s19 = sld [smem:[#allocation17_spill]] }
 0x888   : > { %s2612_s20 = sld [smem:[#allocation20_spill]] }
 0x88b   : > { %p28_p12 = scmp.ge.s32.totalorder %s2609_s21, 4  }
 0x88d   :  { %30 = sbr.rel (!%p28_p12) target bundleno = 10 (0xa), region = 135 }
 0x892   :  { %1418 = vsyncpa [#allocation3], 1 }
 0x893   :  { %1420 = vsyncpa [#allocation3 + $0x1], 1 }
 0x894   :  { %1421 = vsyncpa [#allocation6], 1 }
 0x895   :  { %1422 = vsyncpa [#allocation9], 1 }
 0x896   :  { %1423 = vsyncpa [#allocation4], 1 }
 0x897   :  { %1425 = vsyncpa [#allocation4 + $0x1], 1 }

</bundles_post_ra>
